<compile_context>
chip_gen: v7x
topology: tpu7x:2x2x1
jax: 0.10.0
libtpu: 0.0.40
codegen_flags: <defaults>
</compile_context>

<pallas_src>
import functools

import jax
import jax.numpy as jnp
import numpy as np
from jax import lax
from jax.experimental import pallas as pl
from jax.experimental.pallas import tpu as pltpu

NUM_REGION = 19
EPS = 1e-8
HW_TILE_CAP = 2048        # HW (contraction) tile cap; sized for v7x's 64 MiB VMEM


def _pick_vmem_limit_bytes():
    """Per-generation scoped-VMEM limit: ~3/4 of physical VMEM
    (96 MiB on v5e/v6e, 48 MiB on v7x), conservative fallback if unavailable."""
    try:
        cap = pltpu.get_tpu_info().vmem_capacity_bytes
    except Exception:
        cap = 64 * 1024 * 1024
    return int(min(cap * 3 // 4, 100 * 1024 * 1024))


def _region_gram_mse_kernel(x_ref, y_ref, m_ref, inv2_ref, o_ref, acc_ref,
                            *, channels, regions, matmul_dtype):
    """One grid step = one (batch, HW-tile) pair; ALL regions per step.

    x_ref, y_ref: (1, C, HWt) feature tiles
    m_ref:        (1, R_pad, HWt) float32 region masks (padded rows/cols zero)
    inv2_ref:     (1, R_pad, 1) float32 per-region 0.25/(C*(mask_sum+eps))^2
    o_ref:        (1, 8, 128) lane/sublane-dense scalar output block
    acc_ref:      (R_pad*C, C) float32 stacked-gram accumulator (VMEM scratch)
    """
    hw_i = pl.program_id(1)

    @pl.when(hw_i == 0)
    def _init():
        acc_ref[...] = jnp.zeros_like(acc_ref)

    x = x_ref[0]                              # (C, HWt) f32
    y = y_ref[0]                              # (C, HWt) f32
    m = m_ref[0]                              # (R_pad, HWt) f32

    # Region-invariant terms (hoisted over regions):
    #   A_r A_r^T - B_r B_r^T = 0.5*(G_r + G_r^T),
    #   G_r = ((x - y) * m_r^2) @ (x + y)^T      (one-sided squared mask)
    d = x - y
    s = x + y
    m2 = m * m                                # m^2, exact for soft masks too

    hw_t = d.shape[-1]
    # Stack all regions' masked differences -> single MXU-filling matmul/step.
    dm = (m2[:, None, :] * d[None, :, :]).reshape(regions * channels, hw_t)

    acc_ref[...] += lax.dot_general(
        dm.astype(matmul_dtype), s.astype(matmul_dtype),
        dimension_numbers=(((1,), (1,)), ((), ())),   # contract trailing HW
        preferred_element_type=jnp.float32)           # (R_pad*C, C)

    @pl.when(hw_i == pl.num_programs(1) - 1)
    def _finalize():
        # Runs once per batch element, outside the HW accumulation loop.
        total = jnp.float32(0.0)
        for g in range(regions):              # small static unroll, tiny CxC work
            blk = acc_ref[g * channels:(g + 1) * channels, :]   # (C, C) = G_g
            sym = blk + blk.T                  # 2*(A_g A_g^T - B_g B_g^T), unnormalized
            # sum((0.5*inv*sym)^2) = 0.25*inv^2*sum(sym^2) = inv2_g * sum(sym^2)
            total = total + inv2_ref[0, g, 0] * jnp.sum(sym * sym)
        o_ref[...] = jnp.broadcast_to(total, o_ref.shape)


def _region_style_layer_loss(x_feat, y_feat, mask_resized, *, eps=EPS,
                             matmul_dtype=jnp.float32):
    """x_feat, y_feat: (B, C, H, W); mask_resized: (B, R, H, W). Returns scalar MSE.

    matmul_dtype=jnp.bfloat16 halves MXU cycles (v5e) / doubles MXU rate on
    v6e/v7x; elementwise d/s/mask math stays f32 and the gram accumulates in
    f32 either way.  f32 default keeps the test tight vs the f32 reference.
    """
    B, C, H, W = x_feat.shape
    R = mask_resized.shape[1]
    HW = H * W
    R_pad = -(-R // 8) * 8                    # pad regions to a sublane multiple

    x = x_feat.reshape(B, C, HW).astype(jnp.float32)
    y = y_feat.reshape(B, C, HW).astype(jnp.float32)
    m = mask_resized.reshape(B, R, HW).astype(jnp.float32)

    # Per-region normalization (tiny JAX reduction), applied inside the kernel
    # as a scalar AFTER the squared-sum reduction.
    inv = 1.0 / (C * (jnp.sum(m, axis=-1) + eps))              # (B, R)
    inv2 = 0.25 * inv * inv
    inv2 = jnp.pad(inv2, ((0, 0), (0, R_pad - R)))[..., None]  # (B, R_pad, 1)

    if R_pad != R:
        # Padded regions have all-zero masks -> zero gram rows -> zero loss.
        m = jnp.pad(m, ((0, 0), (0, R_pad - R), (0, 0)))

    # HW (contraction) tiling; zero-padding HW is exact (padded cols have m=0).
    if HW <= HW_TILE_CAP:
        hw_tile, num_hw = HW, 1
    else:
        hw_tile = HW_TILE_CAP
        num_hw = -(-HW // hw_tile)
        pad = num_hw * hw_tile - HW
        if pad:
            x = jnp.pad(x, ((0, 0), (0, 0), (0, pad)))
            y = jnp.pad(y, ((0, 0), (0, 0), (0, pad)))
            m = jnp.pad(m, ((0, 0), (0, 0), (0, pad)))

    kernel = functools.partial(_region_gram_mse_kernel, channels=C,
                               regions=R_pad, matmul_dtype=matmul_dtype)

    out = pl.pallas_call(
        kernel,
        out_shape=jax.ShapeDtypeStruct((B, 8, 128), jnp.float32),
        grid_spec=pltpu.PrefetchScalarGridSpec(
            num_scalar_prefetch=0,
            grid=(B, num_hw),
            in_specs=[
                pl.BlockSpec((1, C, hw_tile), lambda b, hw: (b, 0, hw)),
                pl.BlockSpec((1, C, hw_tile), lambda b, hw: (b, 0, hw)),
                pl.BlockSpec((1, R_pad, hw_tile), lambda b, hw: (b, 0, hw)),
                pl.BlockSpec((1, R_pad, 1), lambda b, hw: (b, 0, 0)),
            ],
            # One lane/sublane-dense (8,128) block per batch element: unmasked
            # full-vreg store instead of a 1-wide masked vst.msk per step.
            out_specs=pl.BlockSpec((1, 8, 128), lambda b, hw: (b, 0, 0)),
            scratch_shapes=[pltpu.VMEM((R_pad * C, C), jnp.float32)],
        ),
        compiler_params=pltpu.CompilerParams(
            dimension_semantics=("parallel", "arbitrary"),
            vmem_limit_bytes=_pick_vmem_limit_bytes()),
    )(x, y, m, inv2)

    # torch.nn.MSELoss default reduction='mean' over the (B, R, C, C) gram stacks.
    return jnp.sum(out[:, 0, 0]) / (B * R * C * C)


def _interpolate_nearest(mask, size):
    """torch.nn.functional.interpolate(mask, size) with default mode='nearest'."""
    B, R, H0, W0 = mask.shape
    H, W = size
    rows = (jnp.arange(H) * H0) // H
    cols = (jnp.arange(W) * W0) // W
    return mask[:, :, rows[:, None], cols[None, :]]


def region_style_loss(x_feats, y_feats, mask):
    """Full RegionStyleLoss.forward: sums per-layer MSE of region gram matrices
    over feature layers [2:]."""
    loss = jnp.float32(0.0)
    for x_feat, y_feat in zip(x_feats[2:], y_feats[2:]):
        H, W = x_feat.shape[2], x_feat.shape[3]
        tmp_mask = _interpolate_nearest(mask, (H, W))
        loss = loss + _region_style_layer_loss(x_feat, y_feat, tmp_mask)
    return loss


# ----------------------------- pure-JAX reference -----------------------------
def _ref_layer_loss(x_feat, y_feat, mask_resized, eps=EPS):
    B, C, H, W = x_feat.shape
    R = mask_resized.shape[1]
    HW = H * W
    x = x_feat.reshape(B, C, HW)
    y = y_feat.reshape(B, C, HW)
    m = mask_resized.reshape(B, R, HW)

    def gram(inp):
        im = inp[:, None, :, :] * m[:, :, None, :]            # (B, R, C, HW)
        g = jnp.einsum('brch,brdh->brcd', im, im)              # (B, R, C, C)
        msum = m.sum(-1) + eps                                 # (B, R)
        return g / (C * msum)[:, :, None, None]

    gx = gram(x)
    gy = gram(y)
    return jnp.mean((gx - gy) ** 2)


def _ref_region_style_loss(x_feats, y_feats, mask):
    loss = jnp.float32(0.0)
    for x_feat, y_feat in zip(x_feats[2:], y_feats[2:]):
        H, W = x_feat.shape[2], x_feat.shape[3]
        tmp_mask = _interpolate_nearest(mask, (H, W))
        loss = loss + _ref_layer_loss(x_feat, y_feat, tmp_mask)
    return loss


if __name__ == "__main__":
    key = jax.random.PRNGKey(0)
    k_mask, k_x, k_y = jax.random.split(key, 3)

    B = 2
    # Small synthetic feature pyramid (NCHW); only layers [2:] are used.
    feat_shapes = [(B, 4, 16, 16), (B, 4, 16, 16), (B, 8, 16, 16), (B, 8, 8, 8)]

    xks = jax.random.split(k_x, len(feat_shapes))
    yks = jax.random.split(k_y, len(feat_shapes))
    x_feats = [jax.random.normal(k, s, dtype=jnp.float32) for k, s in zip(xks, feat_shapes)]
    y_feats = [jax.random.normal(k, s, dtype=jnp.float32) for k, s in zip(yks, feat_shapes)]

    # One-hot region mask (B, num_region, 16, 16), like a segmentation mask.
    cat = jax.random.randint(k_mask, (B, 16, 16), 0, NUM_REGION)
    mask = jax.nn.one_hot(cat, NUM_REGION, axis=1, dtype=jnp.float32)

    loss = region_style_loss(x_feats, y_feats, mask)
    jax.block_until_ready(loss)

    ref = _ref_region_style_loss(x_feats, y_feats, mask)
    jax.block_until_ready(ref)

    np.testing.assert_allclose(np.asarray(loss), np.asarray(ref), rtol=1e-3, atol=1e-6)
    print("KERNEL_OK")
</pallas_src>

<mosaic_0001>
module attributes {stable_mosaic.version = 11 : i64} {
  func.func @_region_gram_mse_kernel(%arg0: i32, %arg1: i32, %arg2: memref<1x8x256xf32, #tpu.memory_space<vmem>>, %arg3: memref<1x8x256xf32, #tpu.memory_space<vmem>>, %arg4: memref<1x24x256xf32, #tpu.memory_space<vmem>>, %arg5: memref<1x24x1xf32, #tpu.memory_space<vmem>>, %arg6: memref<1x8x128xf32, #tpu.memory_space<vmem>>, %arg7: memref<192x8xf32, #tpu.memory_space<vmem>>) attributes {dimension_semantics = [#tpu.dimension_semantics<parallel>, #tpu.dimension_semantics<arbitrary>], iteration_bounds = array<i64: 2, 1>, scalar_prefetch = 0 : i64, scratch_operands = 1 : i64, tpu.core_type = #tpu.core_type<tc>, window_params = [{transform_indices = @transform_0, window_bounds = array<i64: 1, 8, 256>}, {transform_indices = @transform_1, window_bounds = array<i64: 1, 8, 256>}, {transform_indices = @transform_2, window_bounds = array<i64: 1, 24, 256>}, {transform_indices = @transform_3, window_bounds = array<i64: 1, 24, 1>}, {transform_indices = @transform_4, window_bounds = array<i64: 1, 8, 128>}]} {
    %c0_i32 = arith.constant 0 : i32
    %0 = arith.cmpi eq, %arg1, %c0_i32 : i32
    %1 = arith.extui %0 : i1 to i32
    %c0_i32_0 = arith.constant 0 : i32
    %2 = arith.cmpi ne, %1, %c0_i32_0 : i32
    scf.if %2 {
      %cst_15 = arith.constant 0.000000e+00 : f32
      %25 = vector.broadcast %cst_15 : f32 to vector<192x8xf32>
      %c0_16 = arith.constant 0 : index
      %c0_17 = arith.constant 0 : index
      %26 = vector.load %arg7[%c0_16, %c0_17] : memref<192x8xf32, #tpu.memory_space<vmem>>, vector<192x8xf32>
      tpu.vector_store %arg7[%c0_16, %c0_17], %25 {strides = array<i32>} : memref<192x8xf32, #tpu.memory_space<vmem>>, vector<192x8xf32>,
    } else {
    }
    %c0 = arith.constant 0 : index
    %c0_1 = arith.constant 0 : index
    %c0_2 = arith.constant 0 : index
    %3 = vector.load %arg2[%c0, %c0_1, %c0_2] : memref<1x8x256xf32, #tpu.memory_space<vmem>>, vector<1x8x256xf32>
    %4 = vector.shape_cast %3 : vector<1x8x256xf32> to vector<8x256xf32>
    %c0_3 = arith.constant 0 : index
    %c0_4 = arith.constant 0 : index
    %c0_5 = arith.constant 0 : index
    %5 = vector.load %arg3[%c0_3, %c0_4, %c0_5] : memref<1x8x256xf32, #tpu.memory_space<vmem>>, vector<1x8x256xf32>
    %6 = vector.shape_cast %5 : vector<1x8x256xf32> to vector<8x256xf32>
    %c0_6 = arith.constant 0 : index
    %c0_7 = arith.constant 0 : index
    %c0_8 = arith.constant 0 : index
    %7 = vector.load %arg4[%c0_6, %c0_7, %c0_8] : memref<1x24x256xf32, #tpu.memory_space<vmem>>, vector<1x24x256xf32>
    %8 = vector.shape_cast %7 : vector<1x24x256xf32> to vector<24x256xf32>
    %9 = arith.subf %4, %6 : vector<8x256xf32>
    %10 = arith.addf %4, %6 : vector<8x256xf32>
    %11 = arith.mulf %8, %8 : vector<24x256xf32>
    %12 = vector.shape_cast %11 : vector<24x256xf32> to vector<24x1x256xf32>
    %13 = vector.shape_cast %9 : vector<8x256xf32> to vector<1x8x256xf32>
    %14 = vector.broadcast %12 : vector<24x1x256xf32> to vector<24x8x256xf32>
    %15 = vector.broadcast %13 : vector<1x8x256xf32> to vector<24x8x256xf32>
    %16 = arith.mulf %14, %15 : vector<24x8x256xf32>
    %17 = vector.shape_cast %16 : vector<24x8x256xf32> to vector<192x256xf32>
    %c0_9 = arith.constant 0 : index
    %c0_10 = arith.constant 0 : index
    %18 = vector.load %arg7[%c0_9, %c0_10] : memref<192x8xf32, #tpu.memory_space<vmem>>, vector<192x8xf32>
    %cst = arith.constant dense<0.000000e+00> : vector<192x8xf32>
    %19 = tpu.matmul %17, %10, %cst {dimension_numbers = #tpu.dot_dimension_numbers<[1], [1], [0], [0], [0, 0, 1, 0], [], []>} : vector<192x256xf32>, vector<8x256xf32>, vector<192x8xf32> -> vector<192x8xf32>
    %20 = arith.addf %18, %19 : vector<192x8xf32>
    %c0_11 = arith.constant 0 : index
    %c0_12 = arith.constant 0 : index
    %21 = vector.load %arg7[%c0_11, %c0_12] : memref<192x8xf32, #tpu.memory_space<vmem>>, vector<192x8xf32>
    tpu.vector_store %arg7[%c0_11, %c0_12], %20 {strides = array<i32>} : memref<192x8xf32, #tpu.memory_space<vmem>>, vector<192x8xf32>,
    %c0_i32_13 = arith.constant 0 : i32
    %22 = arith.cmpi eq, %arg1, %c0_i32_13 : i32
    %23 = arith.extui %22 : i1 to i32
    %c0_i32_14 = arith.constant 0 : i32
    %24 = arith.cmpi ne, %23, %c0_i32_14 : i32
    scf.if %24 {
      %c0_15 = arith.constant 0 : index
      %c0_16 = arith.constant 0 : index
      %25 = vector.load %arg7[%c0_15, %c0_16] : memref<192x8xf32, #tpu.memory_space<vmem>>, vector<8x8xf32>
      %26 = tpu.transpose %25, [1, 0] : vector<8x8xf32> -> vector<8x8xf32>
      %27 = arith.addf %25, %26 : vector<8x8xf32>
      %c0_17 = arith.constant 0 : index
      %c0_18 = arith.constant 0 : index
      %c0_19 = arith.constant 0 : index
      %28 = vector.load %arg5[%c0_17, %c0_18, %c0_19] : memref<1x24x1xf32, #tpu.memory_space<vmem>>, vector<1x1x1xf32>
      %29 = vector.extract %28[0, 0, 0] : f32 from vector<1x1x1xf32>
      %30 = arith.mulf %27, %27 : vector<8x8xf32>
      %31 = vector.shape_cast %30 : vector<8x8xf32> to vector<1x8x8xf32>
      %cst_20 = arith.constant dense<0.000000e+00> : vector<1xf32>
      %32 = vector.multi_reduction <add>, %31, %cst_20 [1, 2] : vector<1x8x8xf32> to vector<1xf32>
      %33 = vector.shape_cast %32 : vector<1xf32> to vector<1x1x1xf32>
      %34 = vector.extract %33[0, 0, 0] : f32 from vector<1x1x1xf32>
      %35 = arith.mulf %29, %34 : f32
      %cst_21 = arith.constant 0.000000e+00 : f32
      %36 = arith.addf %cst_21, %35 : f32
      %c8 = arith.constant 8 : index
      %c0_22 = arith.constant 0 : index
      %37 = vector.load %arg7[%c8, %c0_22] : memref<192x8xf32, #tpu.memory_space<vmem>>, vector<8x8xf32>
      %38 = tpu.transpose %37, [1, 0] : vector<8x8xf32> -> vector<8x8xf32>
      %39 = arith.addf %37, %38 : vector<8x8xf32>
      %c0_23 = arith.constant 0 : index
      %c1 = arith.constant 1 : index
      %c0_24 = arith.constant 0 : index
      %40 = vector.load %arg5[%c0_23, %c1, %c0_24] : memref<1x24x1xf32, #tpu.memory_space<vmem>>, vector<1x1x1xf32>
      %41 = vector.extract %40[0, 0, 0] : f32 from vector<1x1x1xf32>
      %42 = arith.mulf %39, %39 : vector<8x8xf32>
      %43 = vector.shape_cast %42 : vector<8x8xf32> to vector<1x8x8xf32>
      %cst_25 = arith.constant dense<0.000000e+00> : vector<1xf32>
      %44 = vector.multi_reduction <add>, %43, %cst_25 [1, 2] : vector<1x8x8xf32> to vector<1xf32>
      %45 = vector.shape_cast %44 : vector<1xf32> to vector<1x1x1xf32>
      %46 = vector.extract %45[0, 0, 0] : f32 from vector<1x1x1xf32>
      %47 = arith.mulf %41, %46 : f32
      %48 = arith.addf %36, %47 : f32
      %c16 = arith.constant 16 : index
      %c0_26 = arith.constant 0 : index
      %49 = vector.load %arg7[%c16, %c0_26] : memref<192x8xf32, #tpu.memory_space<vmem>>, vector<8x8xf32>
      %50 = tpu.transpose %49, [1, 0] : vector<8x8xf32> -> vector<8x8xf32>
      %51 = arith.addf %49, %50 : vector<8x8xf32>
      %c0_27 = arith.constant 0 : index
      %c2 = arith.constant 2 : index
      %c0_28 = arith.constant 0 : index
      %52 = vector.load %arg5[%c0_27, %c2, %c0_28] : memref<1x24x1xf32, #tpu.memory_space<vmem>>, vector<1x1x1xf32>
      %53 = vector.extract %52[0, 0, 0] : f32 from vector<1x1x1xf32>
      %54 = arith.mulf %51, %51 : vector<8x8xf32>
      %55 = vector.shape_cast %54 : vector<8x8xf32> to vector<1x8x8xf32>
      %cst_29 = arith.constant dense<0.000000e+00> : vector<1xf32>
      %56 = vector.multi_reduction <add>, %55, %cst_29 [1, 2] : vector<1x8x8xf32> to vector<1xf32>
      %57 = vector.shape_cast %56 : vector<1xf32> to vector<1x1x1xf32>
      %58 = vector.extract %57[0, 0, 0] : f32 from vector<1x1x1xf32>
      %59 = arith.mulf %53, %58 : f32
      %60 = arith.addf %48, %59 : f32
      %c24 = arith.constant 24 : index
      %c0_30 = arith.constant 0 : index
      %61 = vector.load %arg7[%c24, %c0_30] : memref<192x8xf32, #tpu.memory_space<vmem>>, vector<8x8xf32>
      %62 = tpu.transpose %61, [1, 0] : vector<8x8xf32> -> vector<8x8xf32>
      %63 = arith.addf %61, %62 : vector<8x8xf32>
      %c0_31 = arith.constant 0 : index
      %c3 = arith.constant 3 : index
      %c0_32 = arith.constant 0 : index
      %64 = vector.load %arg5[%c0_31, %c3, %c0_32] : memref<1x24x1xf32, #tpu.memory_space<vmem>>, vector<1x1x1xf32>
      %65 = vector.extract %64[0, 0, 0] : f32 from vector<1x1x1xf32>
      %66 = arith.mulf %63, %63 : vector<8x8xf32>
      %67 = vector.shape_cast %66 : vector<8x8xf32> to vector<1x8x8xf32>
      %cst_33 = arith.constant dense<0.000000e+00> : vector<1xf32>
      %68 = vector.multi_reduction <add>, %67, %cst_33 [1, 2] : vector<1x8x8xf32> to vector<1xf32>
      %69 = vector.shape_cast %68 : vector<1xf32> to vector<1x1x1xf32>
      %70 = vector.extract %69[0, 0, 0] : f32 from vector<1x1x1xf32>
      %71 = arith.mulf %65, %70 : f32
      %72 = arith.addf %60, %71 : f32
      %c32 = arith.constant 32 : index
      %c0_34 = arith.constant 0 : index
      %73 = vector.load %arg7[%c32, %c0_34] : memref<192x8xf32, #tpu.memory_space<vmem>>, vector<8x8xf32>
      %74 = tpu.transpose %73, [1, 0] : vector<8x8xf32> -> vector<8x8xf32>
      %75 = arith.addf %73, %74 : vector<8x8xf32>
      %c0_35 = arith.constant 0 : index
      %c4 = arith.constant 4 : index
      %c0_36 = arith.constant 0 : index
      %76 = vector.load %arg5[%c0_35, %c4, %c0_36] : memref<1x24x1xf32, #tpu.memory_space<vmem>>, vector<1x1x1xf32>
      %77 = vector.extract %76[0, 0, 0] : f32 from vector<1x1x1xf32>
      %78 = arith.mulf %75, %75 : vector<8x8xf32>
      %79 = vector.shape_cast %78 : vector<8x8xf32> to vector<1x8x8xf32>
      %cst_37 = arith.constant dense<0.000000e+00> : vector<1xf32>
      %80 = vector.multi_reduction <add>, %79, %cst_37 [1, 2] : vector<1x8x8xf32> to vector<1xf32>
      %81 = vector.shape_cast %80 : vector<1xf32> to vector<1x1x1xf32>
      %82 = vector.extract %81[0, 0, 0] : f32 from vector<1x1x1xf32>
      %83 = arith.mulf %77, %82 : f32
      %84 = arith.addf %72, %83 : f32
      %c40 = arith.constant 40 : index
      %c0_38 = arith.constant 0 : index
      %85 = vector.load %arg7[%c40, %c0_38] : memref<192x8xf32, #tpu.memory_space<vmem>>, vector<8x8xf32>
      %86 = tpu.transpose %85, [1, 0] : vector<8x8xf32> -> vector<8x8xf32>
      %87 = arith.addf %85, %86 : vector<8x8xf32>
      %c0_39 = arith.constant 0 : index
      %c5 = arith.constant 5 : index
      %c0_40 = arith.constant 0 : index
      %88 = vector.load %arg5[%c0_39, %c5, %c0_40] : memref<1x24x1xf32, #tpu.memory_space<vmem>>, vector<1x1x1xf32>
      %89 = vector.extract %88[0, 0, 0] : f32 from vector<1x1x1xf32>
      %90 = arith.mulf %87, %87 : vector<8x8xf32>
      %91 = vector.shape_cast %90 : vector<8x8xf32> to vector<1x8x8xf32>
      %cst_41 = arith.constant dense<0.000000e+00> : vector<1xf32>
      %92 = vector.multi_reduction <add>, %91, %cst_41 [1, 2] : vector<1x8x8xf32> to vector<1xf32>
      %93 = vector.shape_cast %92 : vector<1xf32> to vector<1x1x1xf32>
      %94 = vector.extract %93[0, 0, 0] : f32 from vector<1x1x1xf32>
      %95 = arith.mulf %89, %94 : f32
      %96 = arith.addf %84, %95 : f32
      %c48 = arith.constant 48 : index
      %c0_42 = arith.constant 0 : index
      %97 = vector.load %arg7[%c48, %c0_42] : memref<192x8xf32, #tpu.memory_space<vmem>>, vector<8x8xf32>
      %98 = tpu.transpose %97, [1, 0] : vector<8x8xf32> -> vector<8x8xf32>
      %99 = arith.addf %97, %98 : vector<8x8xf32>
      %c0_43 = arith.constant 0 : index
      %c6 = arith.constant 6 : index
      %c0_44 = arith.constant 0 : index
      %100 = vector.load %arg5[%c0_43, %c6, %c0_44] : memref<1x24x1xf32, #tpu.memory_space<vmem>>, vector<1x1x1xf32>
      %101 = vector.extract %100[0, 0, 0] : f32 from vector<1x1x1xf32>
      %102 = arith.mulf %99, %99 : vector<8x8xf32>
      %103 = vector.shape_cast %102 : vector<8x8xf32> to vector<1x8x8xf32>
      %cst_45 = arith.constant dense<0.000000e+00> : vector<1xf32>
      %104 = vector.multi_reduction <add>, %103, %cst_45 [1, 2] : vector<1x8x8xf32> to vector<1xf32>
      %105 = vector.shape_cast %104 : vector<1xf32> to vector<1x1x1xf32>
      %106 = vector.extract %105[0, 0, 0] : f32 from vector<1x1x1xf32>
      %107 = arith.mulf %101, %106 : f32
      %108 = arith.addf %96, %107 : f32
      %c56 = arith.constant 56 : index
      %c0_46 = arith.constant 0 : index
      %109 = vector.load %arg7[%c56, %c0_46] : memref<192x8xf32, #tpu.memory_space<vmem>>, vector<8x8xf32>
      %110 = tpu.transpose %109, [1, 0] : vector<8x8xf32> -> vector<8x8xf32>
      %111 = arith.addf %109, %110 : vector<8x8xf32>
      %c0_47 = arith.constant 0 : index
      %c7 = arith.constant 7 : index
      %c0_48 = arith.constant 0 : index
      %112 = vector.load %arg5[%c0_47, %c7, %c0_48] : memref<1x24x1xf32, #tpu.memory_space<vmem>>, vector<1x1x1xf32>
      %113 = vector.extract %112[0, 0, 0] : f32 from vector<1x1x1xf32>
      %114 = arith.mulf %111, %111 : vector<8x8xf32>
      %115 = vector.shape_cast %114 : vector<8x8xf32> to vector<1x8x8xf32>
      %cst_49 = arith.constant dense<0.000000e+00> : vector<1xf32>
      %116 = vector.multi_reduction <add>, %115, %cst_49 [1, 2] : vector<1x8x8xf32> to vector<1xf32>
      %117 = vector.shape_cast %116 : vector<1xf32> to vector<1x1x1xf32>
      %118 = vector.extract %117[0, 0, 0] : f32 from vector<1x1x1xf32>
      %119 = arith.mulf %113, %118 : f32
      %120 = arith.addf %108, %119 : f32
      %c64 = arith.constant 64 : index
      %c0_50 = arith.constant 0 : index
      %121 = vector.load %arg7[%c64, %c0_50] : memref<192x8xf32, #tpu.memory_space<vmem>>, vector<8x8xf32>
      %122 = tpu.transpose %121, [1, 0] : vector<8x8xf32> -> vector<8x8xf32>
      %123 = arith.addf %121, %122 : vector<8x8xf32>
      %c0_51 = arith.constant 0 : index
      %c8_52 = arith.constant 8 : index
      %c0_53 = arith.constant 0 : index
      %124 = vector.load %arg5[%c0_51, %c8_52, %c0_53] : memref<1x24x1xf32, #tpu.memory_space<vmem>>, vector<1x1x1xf32>
      %125 = vector.extract %124[0, 0, 0] : f32 from vector<1x1x1xf32>
      %126 = arith.mulf %123, %123 : vector<8x8xf32>
      %127 = vector.shape_cast %126 : vector<8x8xf32> to vector<1x8x8xf32>
      %cst_54 = arith.constant dense<0.000000e+00> : vector<1xf32>
      %128 = vector.multi_reduction <add>, %127, %cst_54 [1, 2] : vector<1x8x8xf32> to vector<1xf32>
      %129 = vector.shape_cast %128 : vector<1xf32> to vector<1x1x1xf32>
      %130 = vector.extract %129[0, 0, 0] : f32 from vector<1x1x1xf32>
      %131 = arith.mulf %125, %130 : f32
      %132 = arith.addf %120, %131 : f32
      %c72 = arith.constant 72 : index
      %c0_55 = arith.constant 0 : index
      %133 = vector.load %arg7[%c72, %c0_55] : memref<192x8xf32, #tpu.memory_space<vmem>>, vector<8x8xf32>
      %134 = tpu.transpose %133, [1, 0] : vector<8x8xf32> -> vector<8x8xf32>
      %135 = arith.addf %133, %134 : vector<8x8xf32>
      %c0_56 = arith.constant 0 : index
      %c9 = arith.constant 9 : index
      %c0_57 = arith.constant 0 : index
      %136 = vector.load %arg5[%c0_56, %c9, %c0_57] : memref<1x24x1xf32, #tpu.memory_space<vmem>>, vector<1x1x1xf32>
      %137 = vector.extract %136[0, 0, 0] : f32 from vector<1x1x1xf32>
      %138 = arith.mulf %135, %135 : vector<8x8xf32>
      %139 = vector.shape_cast %138 : vector<8x8xf32> to vector<1x8x8xf32>
      %cst_58 = arith.constant dense<0.000000e+00> : vector<1xf32>
      %140 = vector.multi_reduction <add>, %139, %cst_58 [1, 2] : vector<1x8x8xf32> to vector<1xf32>
      %141 = vector.shape_cast %140 : vector<1xf32> to vector<1x1x1xf32>
      %142 = vector.extract %141[0, 0, 0] : f32 from vector<1x1x1xf32>
      %143 = arith.mulf %137, %142 : f32
      %144 = arith.addf %132, %143 : f32
      %c80 = arith.constant 80 : index
      %c0_59 = arith.constant 0 : index
      %145 = vector.load %arg7[%c80, %c0_59] : memref<192x8xf32, #tpu.memory_space<vmem>>, vector<8x8xf32>
      %146 = tpu.transpose %145, [1, 0] : vector<8x8xf32> -> vector<8x8xf32>
      %147 = arith.addf %145, %146 : vector<8x8xf32>
      %c0_60 = arith.constant 0 : index
      %c10 = arith.constant 10 : index
      %c0_61 = arith.constant 0 : index
      %148 = vector.load %arg5[%c0_60, %c10, %c0_61] : memref<1x24x1xf32, #tpu.memory_space<vmem>>, vector<1x1x1xf32>
      %149 = vector.extract %148[0, 0, 0] : f32 from vector<1x1x1xf32>
      %150 = arith.mulf %147, %147 : vector<8x8xf32>
      %151 = vector.shape_cast %150 : vector<8x8xf32> to vector<1x8x8xf32>
      %cst_62 = arith.constant dense<0.000000e+00> : vector<1xf32>
      %152 = vector.multi_reduction <add>, %151, %cst_62 [1, 2] : vector<1x8x8xf32> to vector<1xf32>
      %153 = vector.shape_cast %152 : vector<1xf32> to vector<1x1x1xf32>
      %154 = vector.extract %153[0, 0, 0] : f32 from vector<1x1x1xf32>
      %155 = arith.mulf %149, %154 : f32
      %156 = arith.addf %144, %155 : f32
      %c88 = arith.constant 88 : index
      %c0_63 = arith.constant 0 : index
      %157 = vector.load %arg7[%c88, %c0_63] : memref<192x8xf32, #tpu.memory_space<vmem>>, vector<8x8xf32>
      %158 = tpu.transpose %157, [1, 0] : vector<8x8xf32> -> vector<8x8xf32>
      %159 = arith.addf %157, %158 : vector<8x8xf32>
      %c0_64 = arith.constant 0 : index
      %c11 = arith.constant 11 : index
      %c0_65 = arith.constant 0 : index
      %160 = vector.load %arg5[%c0_64, %c11, %c0_65] : memref<1x24x1xf32, #tpu.memory_space<vmem>>, vector<1x1x1xf32>
      %161 = vector.extract %160[0, 0, 0] : f32 from vector<1x1x1xf32>
      %162 = arith.mulf %159, %159 : vector<8x8xf32>
      %163 = vector.shape_cast %162 : vector<8x8xf32> to vector<1x8x8xf32>
      %cst_66 = arith.constant dense<0.000000e+00> : vector<1xf32>
      %164 = vector.multi_reduction <add>, %163, %cst_66 [1, 2] : vector<1x8x8xf32> to vector<1xf32>
      %165 = vector.shape_cast %164 : vector<1xf32> to vector<1x1x1xf32>
      %166 = vector.extract %165[0, 0, 0] : f32 from vector<1x1x1xf32>
      %167 = arith.mulf %161, %166 : f32
      %168 = arith.addf %156, %167 : f32
      %c96 = arith.constant 96 : index
      %c0_67 = arith.constant 0 : index
      %169 = vector.load %arg7[%c96, %c0_67] : memref<192x8xf32, #tpu.memory_space<vmem>>, vector<8x8xf32>
      %170 = tpu.transpose %169, [1, 0] : vector<8x8xf32> -> vector<8x8xf32>
      %171 = arith.addf %169, %170 : vector<8x8xf32>
      %c0_68 = arith.constant 0 : index
      %c12 = arith.constant 12 : index
      %c0_69 = arith.constant 0 : index
      %172 = vector.load %arg5[%c0_68, %c12, %c0_69] : memref<1x24x1xf32, #tpu.memory_space<vmem>>, vector<1x1x1xf32>
      %173 = vector.extract %172[0, 0, 0] : f32 from vector<1x1x1xf32>
      %174 = arith.mulf %171, %171 : vector<8x8xf32>
      %175 = vector.shape_cast %174 : vector<8x8xf32> to vector<1x8x8xf32>
      %cst_70 = arith.constant dense<0.000000e+00> : vector<1xf32>
      %176 = vector.multi_reduction <add>, %175, %cst_70 [1, 2] : vector<1x8x8xf32> to vector<1xf32>
      %177 = vector.shape_cast %176 : vector<1xf32> to vector<1x1x1xf32>
      %178 = vector.extract %177[0, 0, 0] : f32 from vector<1x1x1xf32>
      %179 = arith.mulf %173, %178 : f32
      %180 = arith.addf %168, %179 : f32
      %c104 = arith.constant 104 : index
      %c0_71 = arith.constant 0 : index
      %181 = vector.load %arg7[%c104, %c0_71] : memref<192x8xf32, #tpu.memory_space<vmem>>, vector<8x8xf32>
      %182 = tpu.transpose %181, [1, 0] : vector<8x8xf32> -> vector<8x8xf32>
      %183 = arith.addf %181, %182 : vector<8x8xf32>
      %c0_72 = arith.constant 0 : index
      %c13 = arith.constant 13 : index
      %c0_73 = arith.constant 0 : index
      %184 = vector.load %arg5[%c0_72, %c13, %c0_73] : memref<1x24x1xf32, #tpu.memory_space<vmem>>, vector<1x1x1xf32>
      %185 = vector.extract %184[0, 0, 0] : f32 from vector<1x1x1xf32>
      %186 = arith.mulf %183, %183 : vector<8x8xf32>
      %187 = vector.shape_cast %186 : vector<8x8xf32> to vector<1x8x8xf32>
      %cst_74 = arith.constant dense<0.000000e+00> : vector<1xf32>
      %188 = vector.multi_reduction <add>, %187, %cst_74 [1, 2] : vector<1x8x8xf32> to vector<1xf32>
      %189 = vector.shape_cast %188 : vector<1xf32> to vector<1x1x1xf32>
      %190 = vector.extract %189[0, 0, 0] : f32 from vector<1x1x1xf32>
      %191 = arith.mulf %185, %190 : f32
      %192 = arith.addf %180, %191 : f32
      %c112 = arith.constant 112 : index
      %c0_75 = arith.constant 0 : index
      %193 = vector.load %arg7[%c112, %c0_75] : memref<192x8xf32, #tpu.memory_space<vmem>>, vector<8x8xf32>
      %194 = tpu.transpose %193, [1, 0] : vector<8x8xf32> -> vector<8x8xf32>
      %195 = arith.addf %193, %194 : vector<8x8xf32>
      %c0_76 = arith.constant 0 : index
      %c14 = arith.constant 14 : index
      %c0_77 = arith.constant 0 : index
      %196 = vector.load %arg5[%c0_76, %c14, %c0_77] : memref<1x24x1xf32, #tpu.memory_space<vmem>>, vector<1x1x1xf32>
      %197 = vector.extract %196[0, 0, 0] : f32 from vector<1x1x1xf32>
      %198 = arith.mulf %195, %195 : vector<8x8xf32>
      %199 = vector.shape_cast %198 : vector<8x8xf32> to vector<1x8x8xf32>
      %cst_78 = arith.constant dense<0.000000e+00> : vector<1xf32>
      %200 = vector.multi_reduction <add>, %199, %cst_78 [1, 2] : vector<1x8x8xf32> to vector<1xf32>
      %201 = vector.shape_cast %200 : vector<1xf32> to vector<1x1x1xf32>
      %202 = vector.extract %201[0, 0, 0] : f32 from vector<1x1x1xf32>
      %203 = arith.mulf %197, %202 : f32
      %204 = arith.addf %192, %203 : f32
      %c120 = arith.constant 120 : index
      %c0_79 = arith.constant 0 : index
      %205 = vector.load %arg7[%c120, %c0_79] : memref<192x8xf32, #tpu.memory_space<vmem>>, vector<8x8xf32>
      %206 = tpu.transpose %205, [1, 0] : vector<8x8xf32> -> vector<8x8xf32>
      %207 = arith.addf %205, %206 : vector<8x8xf32>
      %c0_80 = arith.constant 0 : index
      %c15 = arith.constant 15 : index
      %c0_81 = arith.constant 0 : index
      %208 = vector.load %arg5[%c0_80, %c15, %c0_81] : memref<1x24x1xf32, #tpu.memory_space<vmem>>, vector<1x1x1xf32>
      %209 = vector.extract %208[0, 0, 0] : f32 from vector<1x1x1xf32>
      %210 = arith.mulf %207, %207 : vector<8x8xf32>
      %211 = vector.shape_cast %210 : vector<8x8xf32> to vector<1x8x8xf32>
      %cst_82 = arith.constant dense<0.000000e+00> : vector<1xf32>
      %212 = vector.multi_reduction <add>, %211, %cst_82 [1, 2] : vector<1x8x8xf32> to vector<1xf32>
      %213 = vector.shape_cast %212 : vector<1xf32> to vector<1x1x1xf32>
      %214 = vector.extract %213[0, 0, 0] : f32 from vector<1x1x1xf32>
      %215 = arith.mulf %209, %214 : f32
      %216 = arith.addf %204, %215 : f32
      %c128 = arith.constant 128 : index
      %c0_83 = arith.constant 0 : index
      %217 = vector.load %arg7[%c128, %c0_83] : memref<192x8xf32, #tpu.memory_space<vmem>>, vector<8x8xf32>
      %218 = tpu.transpose %217, [1, 0] : vector<8x8xf32> -> vector<8x8xf32>
      %219 = arith.addf %217, %218 : vector<8x8xf32>
      %c0_84 = arith.constant 0 : index
      %c16_85 = arith.constant 16 : index
      %c0_86 = arith.constant 0 : index
      %220 = vector.load %arg5[%c0_84, %c16_85, %c0_86] : memref<1x24x1xf32, #tpu.memory_space<vmem>>, vector<1x1x1xf32>
      %221 = vector.extract %220[0, 0, 0] : f32 from vector<1x1x1xf32>
      %222 = arith.mulf %219, %219 : vector<8x8xf32>
      %223 = vector.shape_cast %222 : vector<8x8xf32> to vector<1x8x8xf32>
      %cst_87 = arith.constant dense<0.000000e+00> : vector<1xf32>
      %224 = vector.multi_reduction <add>, %223, %cst_87 [1, 2] : vector<1x8x8xf32> to vector<1xf32>
      %225 = vector.shape_cast %224 : vector<1xf32> to vector<1x1x1xf32>
      %226 = vector.extract %225[0, 0, 0] : f32 from vector<1x1x1xf32>
      %227 = arith.mulf %221, %226 : f32
      %228 = arith.addf %216, %227 : f32
      %c136 = arith.constant 136 : index
      %c0_88 = arith.constant 0 : index
      %229 = vector.load %arg7[%c136, %c0_88] : memref<192x8xf32, #tpu.memory_space<vmem>>, vector<8x8xf32>
      %230 = tpu.transpose %229, [1, 0] : vector<8x8xf32> -> vector<8x8xf32>
      %231 = arith.addf %229, %230 : vector<8x8xf32>
      %c0_89 = arith.constant 0 : index
      %c17 = arith.constant 17 : index
      %c0_90 = arith.constant 0 : index
      %232 = vector.load %arg5[%c0_89, %c17, %c0_90] : memref<1x24x1xf32, #tpu.memory_space<vmem>>, vector<1x1x1xf32>
      %233 = vector.extract %232[0, 0, 0] : f32 from vector<1x1x1xf32>
      %234 = arith.mulf %231, %231 : vector<8x8xf32>
      %235 = vector.shape_cast %234 : vector<8x8xf32> to vector<1x8x8xf32>
      %cst_91 = arith.constant dense<0.000000e+00> : vector<1xf32>
      %236 = vector.multi_reduction <add>, %235, %cst_91 [1, 2] : vector<1x8x8xf32> to vector<1xf32>
      %237 = vector.shape_cast %236 : vector<1xf32> to vector<1x1x1xf32>
      %238 = vector.extract %237[0, 0, 0] : f32 from vector<1x1x1xf32>
      %239 = arith.mulf %233, %238 : f32
      %240 = arith.addf %228, %239 : f32
      %c144 = arith.constant 144 : index
      %c0_92 = arith.constant 0 : index
      %241 = vector.load %arg7[%c144, %c0_92] : memref<192x8xf32, #tpu.memory_space<vmem>>, vector<8x8xf32>
      %242 = tpu.transpose %241, [1, 0] : vector<8x8xf32> -> vector<8x8xf32>
      %243 = arith.addf %241, %242 : vector<8x8xf32>
      %c0_93 = arith.constant 0 : index
      %c18 = arith.constant 18 : index
      %c0_94 = arith.constant 0 : index
      %244 = vector.load %arg5[%c0_93, %c18, %c0_94] : memref<1x24x1xf32, #tpu.memory_space<vmem>>, vector<1x1x1xf32>
      %245 = vector.extract %244[0, 0, 0] : f32 from vector<1x1x1xf32>
      %246 = arith.mulf %243, %243 : vector<8x8xf32>
      %247 = vector.shape_cast %246 : vector<8x8xf32> to vector<1x8x8xf32>
      %cst_95 = arith.constant dense<0.000000e+00> : vector<1xf32>
      %248 = vector.multi_reduction <add>, %247, %cst_95 [1, 2] : vector<1x8x8xf32> to vector<1xf32>
      %249 = vector.shape_cast %248 : vector<1xf32> to vector<1x1x1xf32>
      %250 = vector.extract %249[0, 0, 0] : f32 from vector<1x1x1xf32>
      %251 = arith.mulf %245, %250 : f32
      %252 = arith.addf %240, %251 : f32
      %c152 = arith.constant 152 : index
      %c0_96 = arith.constant 0 : index
      %253 = vector.load %arg7[%c152, %c0_96] : memref<192x8xf32, #tpu.memory_space<vmem>>, vector<8x8xf32>
      %254 = tpu.transpose %253, [1, 0] : vector<8x8xf32> -> vector<8x8xf32>
      %255 = arith.addf %253, %254 : vector<8x8xf32>
      %c0_97 = arith.constant 0 : index
      %c19 = arith.constant 19 : index
      %c0_98 = arith.constant 0 : index
      %256 = vector.load %arg5[%c0_97, %c19, %c0_98] : memref<1x24x1xf32, #tpu.memory_space<vmem>>, vector<1x1x1xf32>
      %257 = vector.extract %256[0, 0, 0] : f32 from vector<1x1x1xf32>
      %258 = arith.mulf %255, %255 : vector<8x8xf32>
      %259 = vector.shape_cast %258 : vector<8x8xf32> to vector<1x8x8xf32>
      %cst_99 = arith.constant dense<0.000000e+00> : vector<1xf32>
      %260 = vector.multi_reduction <add>, %259, %cst_99 [1, 2] : vector<1x8x8xf32> to vector<1xf32>
      %261 = vector.shape_cast %260 : vector<1xf32> to vector<1x1x1xf32>
      %262 = vector.extract %261[0, 0, 0] : f32 from vector<1x1x1xf32>
      %263 = arith.mulf %257, %262 : f32
      %264 = arith.addf %252, %263 : f32
      %c160 = arith.constant 160 : index
      %c0_100 = arith.constant 0 : index
      %265 = vector.load %arg7[%c160, %c0_100] : memref<192x8xf32, #tpu.memory_space<vmem>>, vector<8x8xf32>
      %266 = tpu.transpose %265, [1, 0] : vector<8x8xf32> -> vector<8x8xf32>
      %267 = arith.addf %265, %266 : vector<8x8xf32>
      %c0_101 = arith.constant 0 : index
      %c20 = arith.constant 20 : index
      %c0_102 = arith.constant 0 : index
      %268 = vector.load %arg5[%c0_101, %c20, %c0_102] : memref<1x24x1xf32, #tpu.memory_space<vmem>>, vector<1x1x1xf32>
      %269 = vector.extract %268[0, 0, 0] : f32 from vector<1x1x1xf32>
      %270 = arith.mulf %267, %267 : vector<8x8xf32>
      %271 = vector.shape_cast %270 : vector<8x8xf32> to vector<1x8x8xf32>
      %cst_103 = arith.constant dense<0.000000e+00> : vector<1xf32>
      %272 = vector.multi_reduction <add>, %271, %cst_103 [1, 2] : vector<1x8x8xf32> to vector<1xf32>
      %273 = vector.shape_cast %272 : vector<1xf32> to vector<1x1x1xf32>
      %274 = vector.extract %273[0, 0, 0] : f32 from vector<1x1x1xf32>
      %275 = arith.mulf %269, %274 : f32
      %276 = arith.addf %264, %275 : f32
      %c168 = arith.constant 168 : index
      %c0_104 = arith.constant 0 : index
      %277 = vector.load %arg7[%c168, %c0_104] : memref<192x8xf32, #tpu.memory_space<vmem>>, vector<8x8xf32>
      %278 = tpu.transpose %277, [1, 0] : vector<8x8xf32> -> vector<8x8xf32>
      %279 = arith.addf %277, %278 : vector<8x8xf32>
      %c0_105 = arith.constant 0 : index
      %c21 = arith.constant 21 : index
      %c0_106 = arith.constant 0 : index
      %280 = vector.load %arg5[%c0_105, %c21, %c0_106] : memref<1x24x1xf32, #tpu.memory_space<vmem>>, vector<1x1x1xf32>
      %281 = vector.extract %280[0, 0, 0] : f32 from vector<1x1x1xf32>
      %282 = arith.mulf %279, %279 : vector<8x8xf32>
      %283 = vector.shape_cast %282 : vector<8x8xf32> to vector<1x8x8xf32>
      %cst_107 = arith.constant dense<0.000000e+00> : vector<1xf32>
      %284 = vector.multi_reduction <add>, %283, %cst_107 [1, 2] : vector<1x8x8xf32> to vector<1xf32>
      %285 = vector.shape_cast %284 : vector<1xf32> to vector<1x1x1xf32>
      %286 = vector.extract %285[0, 0, 0] : f32 from vector<1x1x1xf32>
      %287 = arith.mulf %281, %286 : f32
      %288 = arith.addf %276, %287 : f32
      %c176 = arith.constant 176 : index
      %c0_108 = arith.constant 0 : index
      %289 = vector.load %arg7[%c176, %c0_108] : memref<192x8xf32, #tpu.memory_space<vmem>>, vector<8x8xf32>
      %290 = tpu.transpose %289, [1, 0] : vector<8x8xf32> -> vector<8x8xf32>
      %291 = arith.addf %289, %290 : vector<8x8xf32>
      %c0_109 = arith.constant 0 : index
      %c22 = arith.constant 22 : index
      %c0_110 = arith.constant 0 : index
      %292 = vector.load %arg5[%c0_109, %c22, %c0_110] : memref<1x24x1xf32, #tpu.memory_space<vmem>>, vector<1x1x1xf32>
      %293 = vector.extract %292[0, 0, 0] : f32 from vector<1x1x1xf32>
      %294 = arith.mulf %291, %291 : vector<8x8xf32>
      %295 = vector.shape_cast %294 : vector<8x8xf32> to vector<1x8x8xf32>
      %cst_111 = arith.constant dense<0.000000e+00> : vector<1xf32>
      %296 = vector.multi_reduction <add>, %295, %cst_111 [1, 2] : vector<1x8x8xf32> to vector<1xf32>
      %297 = vector.shape_cast %296 : vector<1xf32> to vector<1x1x1xf32>
      %298 = vector.extract %297[0, 0, 0] : f32 from vector<1x1x1xf32>
      %299 = arith.mulf %293, %298 : f32
      %300 = arith.addf %288, %299 : f32
      %c184 = arith.constant 184 : index
      %c0_112 = arith.constant 0 : index
      %301 = vector.load %arg7[%c184, %c0_112] : memref<192x8xf32, #tpu.memory_space<vmem>>, vector<8x8xf32>
      %302 = tpu.transpose %301, [1, 0] : vector<8x8xf32> -> vector<8x8xf32>
      %303 = arith.addf %301, %302 : vector<8x8xf32>
      %c0_113 = arith.constant 0 : index
      %c23 = arith.constant 23 : index
      %c0_114 = arith.constant 0 : index
      %304 = vector.load %arg5[%c0_113, %c23, %c0_114] : memref<1x24x1xf32, #tpu.memory_space<vmem>>, vector<1x1x1xf32>
      %305 = vector.extract %304[0, 0, 0] : f32 from vector<1x1x1xf32>
      %306 = arith.mulf %303, %303 : vector<8x8xf32>
      %307 = vector.shape_cast %306 : vector<8x8xf32> to vector<1x8x8xf32>
      %cst_115 = arith.constant dense<0.000000e+00> : vector<1xf32>
      %308 = vector.multi_reduction <add>, %307, %cst_115 [1, 2] : vector<1x8x8xf32> to vector<1xf32>
      %309 = vector.shape_cast %308 : vector<1xf32> to vector<1x1x1xf32>
      %310 = vector.extract %309[0, 0, 0] : f32 from vector<1x1x1xf32>
      %311 = arith.mulf %305, %310 : f32
      %312 = arith.addf %300, %311 : f32
      %313 = vector.broadcast %312 : f32 to vector<1x8x128xf32>
      %c0_116 = arith.constant 0 : index
      %c0_117 = arith.constant 0 : index
      %c0_118 = arith.constant 0 : index
      %314 = vector.load %arg6[%c0_116, %c0_117, %c0_118] : memref<1x8x128xf32, #tpu.memory_space<vmem>>, vector<1x8x128xf32>
      tpu.vector_store %arg6[%c0_116, %c0_117, %c0_118], %313 {strides = array<i32>} : memref<1x8x128xf32, #tpu.memory_space<vmem>>, vector<1x8x128xf32>,
    } else {
    }
    return
  }
  func.func @transform_0(%arg0: i32, %arg1: i32) -> (i32, i32, i32) {
    %c0_i32 = arith.constant 0 : i32
    %c0_i32_0 = arith.constant 0 : i32
    return %arg0, %c0_i32, %arg1 : i32, i32, i32
  }
  func.func @transform_1(%arg0: i32, %arg1: i32) -> (i32, i32, i32) {
    %c0_i32 = arith.constant 0 : i32
    %c0_i32_0 = arith.constant 0 : i32
    return %arg0, %c0_i32, %arg1 : i32, i32, i32
  }
  func.func @transform_2(%arg0: i32, %arg1: i32) -> (i32, i32, i32) {
    %c0_i32 = arith.constant 0 : i32
    %c0_i32_0 = arith.constant 0 : i32
    return %arg0, %c0_i32, %arg1 : i32, i32, i32
  }
  func.func @transform_3(%arg0: i32, %arg1: i32) -> (i32, i32, i32) {
    %c0_i32 = arith.constant 0 : i32
    %c0_i32_0 = arith.constant 0 : i32
    %c0_i32_1 = arith.constant 0 : i32
    return %arg0, %c0_i32, %c0_i32_0 : i32, i32, i32
  }
  func.func @transform_4(%arg0: i32, %arg1: i32) -> (i32, i32, i32) {
    %c0_i32 = arith.constant 0 : i32
    %c0_i32_0 = arith.constant 0 : i32
    %c0_i32_1 = arith.constant 0 : i32
    return %arg0, %c0_i32, %c0_i32_0 : i32, i32, i32
  }
}

</mosaic_0001>

<bundles_post_ra>
// kernel: tpu_custom_call.1
= control target key start
LH: loop header
LB: loop body
LE: loop exit
PB: predicated region body
PF: predicated region fallthrough
CT: control target
= control target key end

     0   :  { %s3412_s0 = inlined_call_operand.vmem [shape: f32[2,8,256], index: 0, kind: input, shape index: {}]   ;;  %s3413_s1 = inlined_call_operand.hbm [shape: f32[2,8,256], index: 1, kind: input, shape index: {}]   ;;  %s3414_s2 = inlined_call_operand.hbm [shape: f32[2,24,256], index: 2, kind: input, shape index: {}]   ;;  %s3415_s3 = inlined_call_operand.vmem [shape: f32[2,24,1], index: 3, kind: input, shape index: {}]   ;;  %s3416_s4 = inlined_call_operand.hbm [shape: f32[2,8,128], index: 4, kind: output, shape index: {}]  }
   0x1   :  { %3430 = sst [smem:[#allocation21_spill]] %s3412_s0 }
   0x2   :  { %3431 = sst [smem:[#allocation22_spill]] %s3413_s1 }
   0x3   :  { %3432 = sst [smem:[#allocation23_spill]] %s3414_s2 }
   0x4   :  { %3433 = sst [smem:[#allocation24_spill]] %s3415_s3 }
   0x5   :  { %3434 = sst [smem:[#allocation25_spill]] %s3416_s4 }
   0x6   :  { %9 = vsyncpa [#allocation4], 0 }
   0x7   :  { %11 = vsyncpa [#allocation4 + $0x1], 0 }
   0x8   :  { %12 = vsyncpa [#allocation7], 0 }
   0x9   :  { %14 = vsyncpa [#allocation7 + $0x1], 0 }
   0xa   :  { %15 = vsyncpa [#allocation5], 0 }
   0xb   :  { %17 = vsyncpa [#allocation5 + $0x1], 0  ;;  %s2788_s15 = smov 0   ;;  %s2790_s16 = smov 0  }
   0xc   :  { %s2792_s17 = smov 0   ;;  %s2794_s18 = smov 0  }
   0xd   :  { %s2796_s19 = smov 0   ;;  %s2798_s20 = smov 0  }
   0xe LB: > { %3435 = sst [smem:[#allocation12_spill]] %s2734_s15  ;;  %s2415_s21 = sadd.s32 4294967295, %s2754_s20   ;;  %s2754_s20 = sphi %s2798_s20, %s23_s20   ;;  %s2750_s19 = sphi %s2796_s19, %s3469_s19   ;;  %s2746_s18 = sphi %s2794_s18, %s3468_s18   ;;  %s2742_s17 = sphi %s2792_s17, %s3467_s17   ;;  %s2738_s16 = sphi %s2790_s16, %s3466_s16   ;;  %s2734_s15 = sphi %s2788_s15, %s3465_s15  }
   0xf   : > { %3436 = sst [smem:[#allocation13_spill]] %s2738_s16  ;;  %s2416_s22 = sadd.s32 4294967294, %s2754_s20  }
  0x10   : > { %3437 = sst [smem:[#allocation14_spill]] %s2742_s17  ;;  %s35_s23 = sadd.s32 1, %s2750_s19 }
  0x11   : > { %3438 = sst [smem:[#allocation15_spill]] %s2750_s19  ;;  %s72_s24 = sadd.s32 1, %s2742_s17 }
  0x12   : > { %3439 = sst [smem:[#allocation16_spill]] %s2754_s20  ;;  %p37_p0 = scmp.ge.s32.totalorder %s35_s23, 2 }
  0x13   : > { %p79_p1 = scmp.ne.s32.totalorder %s2742_s17, %s2738_s16  ;;  %p80_p2 = scmp.eq.s32.totalorder %s2754_s20, 0 }
  0x14   : > { %p85_p3 = scmp.ne.s32.totalorder %s2738_s16, %s2734_s15  ;;  %s3471_s23 = smov (%p37_p0, %s35_s23), 0 }
  0x15   : > { %3440 = sst [smem:[#allocation17_spill]] %s3471_s23  ;;  %p2829_p4 = por %p80_p2, %p79_p1 }
  0x16   : > { %p86_p5 = scmp.eq.s32.totalorder %s2415_s21, 0  ;;  %s67_s26 = ssub.s32 %s2750_s19, %s3471_s23 }
  0x17   : > { %p163_p6 = scmp.eq.s32.totalorder %s2415_s21, 1  ;;  %p70_p7 = scmp.eq.s32.totalorder %s67_s26, 0 }
  0x18   : > { %p2835_p8 = por %p86_p5, %p85_p3  ;;  %p169_p10 = scmp.eq.s32.totalorder %s2416_s22, 1 }
  0x19   : > { %p2839_p9 = por %p163_p6, %p79_p1  ;;  %p2554_p13 = scmp.lt.s32.totalorder %s2754_s20, 2 }
  0x1a   : > { %s3442_s27 = scalar_select %p2835_p8, 1, 0 }
  0x1b   : > { %s3443_s28 = scalar_select %p2839_p9, 1, 0 }
  0x1c   : > { %s2844_s29 = scalar_select %p70_p7, %s2742_s17, %s72_s24  }
  0x1d   : > { %3444 = sst [smem:[#allocation18_spill]] %s3443_s28  ;;  %p2846_p11 = por %p169_p10, %p85_p3 }
  0x1e   : > { %3445 = sst [smem:[#allocation19_spill]] %s2844_s29  ;;  %s2853_s5 = sand.u32 1, %s2742_s17  }
  0x1f   : > { %s3446_s30 = scalar_select %p2846_p11, 1, 0 }
  0x20   : > { %s2419_s6 = sshll.u32 %s2853_s5, 4  ;;  %s2433_s7 = sshll.u32 %s2750_s19, 8 }
  0x21   : > { %3447 = sst [smem:[#allocation20_spill]] %s3446_s30  ;;  %s3448_s1 = sld [smem:[#allocation22_spill]] }
  0x22   : > { %s206_s11 = scalar_lea.vmem [#allocation3], %s2419_s6  ;;  %p2866_p0 = pnand %p2554_p13, %p2829_p4 }
  0x23   : > { %s216_s12 = sshll.u32 %s206_s11, 4  ;;  %s203_s14 = scalar_lea.sflag [#allocation4], %s2853_s5  ;;  %s2862_s12 = int_to_ptr.vmem [resolvable:$true] %s216_s12 }
  0x24   : > { %p2610_p5 = pneg %p2866_p0 }
  0x27   : > { %s2860_s10 = scalar_lea.hbm %s3448_s1, %s2433_s7  ;;  %s2613_s25 = scalar_lea.hbm %s3448_s1, 512 }
  0x28   : > { %s2608_s21 = scalar_lea.hbm %s2860_s10, 256  ;;  %p2614_p4 = scmp.lt.u32.totalorder %s2860_s10, %s3448_s1 }
  0x29   : > { %p2609_p3 = scmp.ne.s32.totalorder %s2860_s10, %s2608_s21  ;;  %p2615_p10 = scmp.lt.u32.totalorder %s2613_s25, %s2608_s21 }
  0x2a   : > { %p2617_p12 = scmp.lt.u32.totalorder %s2608_s21, %s2860_s10 }
  0x2b   : > { %p2611_p6 = pnand %p2610_p5, %p2609_p3  ;;  %p2616_p13 = por %p2615_p10, %p2614_p4 }
  0x2d   : > { %p2612_p7 = pneg %p2611_p6  ;;  %p2618_p1 = por %p2617_p12, %p2616_p13 }
  0x2f   : > { %p2619_p2 = pnand %p2618_p1, %p2612_p7 }
  0x31   : > { %2622 = shalt.err (!%p2619_p2)
}
  0x32   : > { %s2623_s7 = scalar_lea.vmem %s2862_s12, 256  ;;  %s2756_s8 = smov [#allocation3]  }
  0x33   : > { %p2624_p3 = scmp.ne.s32.totalorder %s2862_s12, %s2623_s7  ;;  %s2628_s9 = sshll.u32 %s2756_s8, 4  ;;  %s2629_s9 = int_to_ptr.vmem [resolvable:$false] %s2628_s9 }
  0x34   : > { %s2630_s11 = scalar_lea.vmem %s2629_s9, 512  ;;  %p2631_p9 = scmp.lt.s32.totalorder %s2862_s12, %s2629_s9 }
  0x35   : > { %p2626_p6 = pnand %p2624_p3, %p2610_p5  ;;  %p2632_p4 = scmp.lt.s32.totalorder %s2630_s11, %s2623_s7 }
  0x37   : > { %p2627_p11 = pneg %p2626_p6  ;;  %p2633_p10 = por %p2632_p4, %p2631_p9 }
  0x39   : > { %p2634_p12 = pnand %p2633_p10, %p2627_p11 }
  0x3b   : > { %2637 = shalt.err (!%p2634_p12)
}
  0x3c   : > { %2546 = dma.hbm_to_vmem [thread:$0]  (!%p2866_p0), %s2860_s10, 256, %s2862_s12, %s203_s14  }
  0x3d   : > { %p3450_p1 = scmp.lt.s32.totalorder %s2754_s20, 3  ;;  %p3451_p2 = scmp.ge.s32.totalorder %s2754_s20, 1 }
  0x3e   : > { %s2437_s22 = smul.u32 48, %s2853_s5  ;;  %s3453_s2 = sld [smem:[#allocation23_spill]] }
  0x3f   : > { %p2902_p7 = pnand %p3451_p2, %p3450_p1  ;;  %s2438_s24 = smul.u32 768, %s2750_s19 }
  0x40   : > { %s227_s7 = scalar_lea.vmem [#allocation6], %s2437_s22  ;;  %s224_s10 = scalar_lea.sflag [#allocation7], %s2853_s5 }
  0x41   : > { %s236_s8 = sshll.u32 %s227_s7, 4  ;;  %s2913_s8 = int_to_ptr.vmem [resolvable:$true] %s236_s8 }
  0x44   : > { %s2911_s6 = scalar_lea.hbm %s3453_s2, %s2438_s24  ;;  %s2643_s11 = scalar_lea.hbm %s3453_s2, 1536 }
  0x45   : > { %s2638_s12 = scalar_lea.hbm %s2911_s6, 768  ;;  %p2644_p3 = scmp.lt.u32.totalorder %s2911_s6, %s3453_s2 }
  0x46   : > { %p2639_p9 = scmp.ne.s32.totalorder %s2911_s6, %s2638_s12  ;;  %p2645_p6 = scmp.lt.u32.totalorder %s2643_s11, %s2638_s12 }
  0x47   : > { %p2647_p10 = scmp.lt.u32.totalorder %s2638_s12, %s2911_s6 }
  0x48   : > { %p2641_p11 = pnand %p2639_p9, %p2610_p5  ;;  %p2646_p4 = por %p2645_p6, %p2644_p3 }
  0x4a   : > { %p2642_p13 = pneg %p2641_p11  ;;  %p2648_p12 = por %p2647_p10, %p2646_p4 }
  0x4c   : > { %p2649_p1 = pnand %p2648_p12, %p2642_p13 }
  0x4e   : > { %2652 = shalt.err (!%p2649_p1)
}
  0x4f   : > { %s2653_s22 = scalar_lea.vmem %s2913_s8, 768  ;;  %s2757_s26 = smov [#allocation6]  }
  0x50   : > { %p2654_p2 = scmp.ne.s32.totalorder %s2913_s8, %s2653_s22  ;;  %s2658_s7 = sshll.u32 %s2757_s26, 4  ;;  %s2659_s7 = int_to_ptr.vmem [resolvable:$false] %s2658_s7 }
  0x51   : > { %s2660_s14 = scalar_lea.vmem %s2659_s7, 1536  ;;  %p2661_p8 = scmp.lt.s32.totalorder %s2913_s8, %s2659_s7 }
  0x52   : > { %p2656_p9 = pnand %p2654_p2, %p2610_p5  ;;  %p2662_p3 = scmp.lt.s32.totalorder %s2660_s14, %s2653_s22 }
  0x54   : > { %p2657_p11 = pneg %p2656_p9  ;;  %p2663_p6 = por %p2662_p3, %p2661_p8 }
  0x56   : > { %p2664_p4 = pnand %p2663_p6, %p2657_p11 }
  0x58   : > { %2667 = shalt.err (!%p2664_p4)
}
  0x59   : > { %s2758_s12 = smov 256   ;;  %s2759_s9 = smov 16  }
  0x5a   : > { %2549 = dma.hbm_to_vmem [thread:$0]  (!%p2866_p0), %s2911_s6, 768, %s2913_s8, %s224_s10, %s2758_s12, %s2758_s12, %s2759_s9  }
  0x5b   : > { %256 = sbr.rel (%p2902_p7) target bundleno = 959 (0x3bf), region = 36  ;;  %s2944_s11 = sand.u32 (!%p2902_p7), 1, %s2738_s16  }
  0x5c   : > { %s2424_s24 = sshll.u32 (!%p2902_p7), %s2944_s11, 4  ;;  %s259_s25 = scalar_lea.sflag (!%p2902_p7), [#allocation4], %s2944_s11 }
  0x5d   : > { %s2948_s22 = scalar_lea.vmem (!%p2902_p7), [#allocation3], %s2424_s24  ;;  %p3454_p8 = scmp.ne.s32.totalorder (!%p2902_p7), %s3442_s27, 0 }
  0x62   : > { %2721 = dma.done.wait (%p3454_p8), %s259_s25, 256  }
  0x63   : > { %2723 = vsyncadd (%p3454_p8), %s259_s25, 4294967040  ;;  %s2439_s5 = smul.u32 48, %s2944_s11  ;;  %s268_s13 = scalar_lea.sflag [#allocation7], %s2944_s11 }
  0x65   : > { %s2956_s21 = scalar_lea.vmem [#allocation6], %s2439_s5 }
  0x66   : > { %2725 = dma.done.wait (%p3454_p8), %s268_s13, 768  }
  0x67   : > { %2727 = vsyncadd (%p3454_p8), %s268_s13, 4294966528  ;;  %p316_p0 = scmp.lt.s32.totalorder %s2746_s18, 1  ;;  %vm336_vm0 = vcmask 64512   ;;  %v2760_v0 = vmov 1966171168   ;;  %v392_v2 = vlaneseq  ;;  %v2761_v3 = vmov 0.0  }
  0x68   : > { %v390_v1 = vunpack.c.l.s4 %v2760_v0  ;;  %337 = vst.msk [vmem:[#allocation2] sm:$0xff] %vm336_vm0, %v2761_v3  ;;  %338 = vst.msk [vmem:[#allocation2 + $0x8] sm:$0xff] %vm336_vm0, %v2761_v3  ;;  %s3455_s0 = sld [smem:[#allocation21_spill]]  ;;  %v364_v7 = vld [vmem:[%s2948_s22 + $0x8] sm:$0xff]  ;;  %v363_v10 = vld [vmem:[%s2948_s22] sm:$0xff]  ;;  %s3456_s3 = sld [smem:[#allocation24_spill]] }
  0x69   : > { %339 = vst.msk [vmem:[#allocation2 + $0x10] sm:$0xff] %vm336_vm0, %v2761_v3  ;;  %340 = vst.msk [vmem:[#allocation2 + $0x18] sm:$0xff] %vm336_vm0, %v2761_v3  ;;  %s2990_s27 = scalar_select %p316_p0, %s2746_s18, 1  ;;  %v393_v5 = vshrl.u32 %v392_v2, 7  ;;  %v365_v11 = vld [vmem:[%s2956_s21] sm:$0xff]  ;;  %v366_v12 = vld [vmem:[%s2956_s21 + $0x8] sm:$0xff] }
  0x6a   : > { %341 = vst.msk [vmem:[#allocation2 + $0x20] sm:$0xff] %vm336_vm0, %v2761_v3  ;;  %342 = vst.msk [vmem:[#allocation2 + $0x28] sm:$0xff] %vm336_vm0, %v2761_v3  ;;  %v391_v4 = vunpack.c.0.s8 %v390_v1  ;;  %v375_v14 = vmul.f32 %v365_v11, %v365_v11  ;;  %v376_v15 = vmul.f32 %v366_v12, %v366_v12  ;;  %v367_v17 = vld [vmem:[%s2956_s21 + $0x10] sm:$0xff]  ;;  %v368_v18 = vld [vmem:[%s2956_s21 + $0x18] sm:$0xff] }
  0x6b   : > { %343 = vst.msk [vmem:[#allocation2 + $0x30] sm:$0xff] %vm336_vm0, %v2761_v3  ;;  %344 = vst.msk [vmem:[#allocation2 + $0x38] sm:$0xff] %vm336_vm0, %v2761_v3  ;;  %s2434_s6 = sshll.u32 %s2990_s27, 4  ;;  %v3004_v19 = vmul.f32 %v367_v17, %v367_v17  ;;  %v3006_v20 = vmul.f32 %v368_v18, %v368_v18  ;;  %v3011_v25 = vsub.s32 0, %v393_v5  ;;  %v3013_v26 = vsub.s32 1, %v393_v5  ;;  %v369_v62 = vld [vmem:[%s2956_s21 + $0x20] sm:$0xff] }
  0x6c   : > { %345 = vst.msk [vmem:[#allocation2 + $0x40] sm:$0xff] %vm336_vm0, %v2761_v3  ;;  %346 = vst.msk [vmem:[#allocation2 + $0x48] sm:$0xff] %vm336_vm0, %v2761_v3  ;;  %v3000_v16 = vsub.s32 %v391_v4, %v393_v5  ;;  %v387_v21 = vcombine.low %v375_v14, %v376_v15  ;;  %v388_v23 = vcombine.high %v375_v14, %v376_v15  ;;  %v370_v63 = vld [vmem:[%s2956_s21 + $0x28] sm:$0xff]  ;;  %s2440_s7 = smul.u32 24, %s2990_s27 }
  0x6d   : > { %347 = vst.msk [vmem:[#allocation2 + $0x50] sm:$0xff] %vm336_vm0, %v2761_v3  ;;  %348 = vst.msk [vmem:[#allocation2 + $0x58] sm:$0xff] %vm336_vm0, %v2761_v3  ;;  %v438_v22 = vcombine.high %v3004_v19, %v3006_v20  ;;  %v437_v61 = vcombine.low %v3004_v19, %v3006_v20  ;;  %v379_v5 = vmul.f32 %v369_v62, %v369_v62 }
  0x6e   : > { %349 = vst.msk [vmem:[#allocation2 + $0x60] sm:$0xff] %vm336_vm0, %v2761_v3  ;;  %350 = vst.msk [vmem:[#allocation2 + $0x68] sm:$0xff] %vm336_vm0, %v2761_v3  ;;  %s323_s26 = scalar_lea.vmem %s3455_s0, %s2434_s6  ;;  %v395_v24 = vrot.slane %v387_v21, %v3000_v16  ;;  %v402_v34 = vrot.slane %v388_v23, %v3000_v16  ;;  %s3231_s9 = scalar_lea.vmem %s3456_s3, %s2440_s7 }
  0x6f   : > { %351 = vst.msk [vmem:[#allocation2 + $0x70] sm:$0xff] %vm336_vm0, %v2761_v3  ;;  %352 = vst.msk [vmem:[#allocation2 + $0x78] sm:$0xff] %vm336_vm0, %v2761_v3  ;;  %v362_v6 = vld [vmem:[%s323_s26 + $0x8] sm:$0xff]  ;;  %v361_v8 = vld [vmem:[%s323_s26] sm:$0xff]  ;;  %v452_v27 = vrot.slane %v438_v22, %v3000_v16 }
  0x70   : > { %353 = vst.msk [vmem:[#allocation2 + $0x80] sm:$0xff] %vm336_vm0, %v2761_v3  ;;  %354 = vst.msk [vmem:[#allocation2 + $0x88] sm:$0xff] %vm336_vm0, %v2761_v3  ;;  %v374_v9 = vadd.f32 %v364_v7, %v362_v6  ;;  %v373_v13 = vadd.f32 %v363_v10, %v361_v8  ;;  %v3016_v28 = vsub.f32 %v362_v6, %v364_v7 }
  0x71   : > { %355 = vst.msk [vmem:[#allocation2 + $0x90] sm:$0xff] %vm336_vm0, %v2761_v3  ;;  %356 = vst.msk [vmem:[#allocation2 + $0x98] sm:$0xff] %vm336_vm0, %v2761_v3  ;;  %v3018_v29 = vsub.f32 %v361_v8, %v363_v10  ;;  %v403_v30 = vcombine.high %v395_v24, %v395_v24  ;;  %v411_v31 = vrot.slane %v395_v24, %v3000_v16 }
  0x72   : > { %357 = vst.msk [vmem:[#allocation2 + $0xa0] sm:$0xff] %vm336_vm0, %v2761_v3  ;;  %358 = vst.msk [vmem:[#allocation2 + $0xa8] sm:$0xff] %vm336_vm0, %v2761_v3  ;;  %849 = vmatprep.subr.mxu0 %v374_v9  ;;  %2435 = vmatprep.subr.mxu1 %v374_v9  ;;  %v454_v32 = vcombine.high %v452_v27, %v452_v27  ;;  %v468_v33 = vrot.slane %v452_v27, %v3000_v16 }
  0x73   : > { %359 = vst.msk [vmem:[#allocation2 + $0xb0] sm:$0xff] %vm336_vm0, %v2761_v3  ;;  %360 = vst.msk [vmem:[#allocation2 + $0xb8] sm:$0xff] %vm336_vm0, %v2761_v3  ;;  %850 = vmatpush1.xpose.msra.mxu0 %v373_v13  ;;  %2436 = vmatpush1.xpose.msra.mxu1 %v373_v13  ;;  %v544_v35 = vrot.slane %v411_v31, %v3013_v26  ;;  %v540_v36 = vrot.slane %v411_v31, %v3011_v25 }
  0x74   : > { %v425_v37 = vrot.slane %v403_v30, %v3000_v16  ;;  %v433_v38 = vcombine.high %v411_v31, %v411_v31  ;;  %v640_v39 = vrot.slane %v468_v33, %v3013_v26  ;;  %v636_v40 = vrot.slane %v468_v33, %v3011_v25 }
  0x75   : > { %v482_v41 = vrot.slane %v454_v32, %v3000_v16  ;;  %v778_v42 = vmul.f32 %v544_v35, %v3016_v28  ;;  %v777_v43 = vmul.f32 %v540_v36, %v3018_v29  ;;  %v418_v53 = vrot.slane %v402_v34, %v3000_v16 }
  0x76   : > { %v552_v44 = vrot.slane %v425_v37, %v3013_v26  ;;  %v548_v45 = vrot.slane %v425_v37, %v3011_v25  ;;  %v802_v46 = vmul.f32 %v640_v39, %v3016_v28  ;;  %v801_v47 = vmul.f32 %v636_v40, %v3018_v29 }
  0x77   : > { %v560_v48 = vrot.slane %v433_v38, %v3013_v26  ;;  %v648_v49 = vrot.slane %v482_v41, %v3013_v26  ;;  %913 = vmatprep.mubr.f32.mxu0 %v778_v42  ;;  %v644_v52 = vrot.slane %v482_v41, %v3011_v25  ;;  %v556_v55 = vrot.slane %v433_v38, %v3011_v25 }
  0x78   : > { %v780_v50 = vmul.f32 %v552_v44, %v3016_v28  ;;  %v779_v51 = vmul.f32 %v548_v45, %v3018_v29  ;;  %914 = vmatmul.mubr.f32.vlgmr.msra.gmra.mrb[0].mxu0 %v777_v43  ;;  %973 = vmatprep.mubr.f32.mxu1 %v802_v46  ;;  %v435_v56 = vcombine.high %v425_v37, %v425_v37 }
  0x79   : > { %v804_v54 = vmul.f32 %v648_v49, %v3016_v28  ;;  %974 = vmatmul.mubr.f32.vlgmr.msra.gmra.mrb[0].mxu1 %v801_v47  ;;  %v782_v57 = vmul.f32 %v560_v48, %v3016_v28  ;;  %v803_v58 = vmul.f32 %v644_v52, %v3018_v29  ;;  %v404_v59 = vcombine.high %v402_v34, %v402_v34 }
  0x7a   : > { %918 = vmatprep.mubr.f32.mxu0 %v780_v50  ;;  %v568_v60 = vrot.slane %v435_v56, %v3013_v26  ;;  %v781_v0 = vmul.f32 %v556_v55, %v3018_v29  ;;  %v564_v1 = vrot.slane %v435_v56, %v3011_v25  ;;  %v576_v2 = vrot.slane %v418_v53, %v3013_v26 }
  0x7b   : > { %978 = vmatprep.mubr.f32.mxu1 %v804_v54  ;;  %v432_v4 = vrot.slane %v404_v59, %v3000_v16  ;;  %v380_v6 = vmul.f32 %v370_v63, %v370_v63  ;;  %v445_v7 = vrot.slane %v437_v61, %v3000_v16  ;;  %v572_v10 = vrot.slane %v418_v53, %v3011_v25 }
  0x7c   : > { %919 = vmatmul.mubr.f32.gmra.mrb[2].mxu0 %v779_v51  ;;  %v784_v3 = vmul.f32 %v568_v60, %v3016_v28  ;;  %v783_v8 = vmul.f32 %v564_v1, %v3018_v29  ;;  %v786_v9 = vmul.f32 %v576_v2, %v3016_v28  ;;  %v434_v12 = vcombine.high %v418_v53, %v418_v53 }
  0x7d   : > { %923 = vmatprep.mubr.f32.mxu0 %v782_v57  ;;  %979 = vmatmul.mubr.f32.gmra.mrb[2].mxu1 %v803_v58  ;;  %v584_v11 = vrot.slane %v432_v4, %v3013_v26  ;;  %v484_v13 = vcombine.high %v468_v33, %v468_v33  ;;  %v486_v14 = vcombine.high %v482_v41, %v482_v41 }
  0x7e   : > { %v487_v15 = vcombine.low %v379_v5, %v380_v6  ;;  %v580_v17 = vrot.slane %v432_v4, %v3011_v25  ;;  %v3062_v18 = vrot.slane %v445_v7, %v3000_v16  ;;  %v785_v20 = vmul.f32 %v572_v10, %v3018_v29 }
  0x7f   : > { %v656_v19 = vrot.slane %v484_v13, %v3013_v26  ;;  %v652_v21 = vrot.slane %v484_v13, %v3011_v25  ;;  %v664_v22 = vrot.slane %v486_v14, %v3013_v26  ;;  %v660_v23 = vrot.slane %v486_v14, %v3011_v25 }
  0x80   : > { %924 = vmatmul.mubr.f32.gmra.mrb[4].mxu0 %v781_v0  ;;  %v788_v24 = vmul.f32 %v584_v11, %v3016_v28  ;;  %v592_v27 = vrot.slane %v434_v12, %v3013_v26  ;;  %v436_v30 = vcombine.high %v432_v4, %v432_v4  ;;  %v495_v34 = vrot.slane %v487_v15, %v3000_v16 }
  0x81   : > { %928 = vmatprep.mubr.f32.mxu0 %v784_v3  ;;  %v806_v31 = vmul.f32 %v656_v19, %v3016_v28  ;;  %v805_v32 = vmul.f32 %v652_v21, %v3018_v29  ;;  %v808_v33 = vmul.f32 %v664_v22, %v3016_v28  ;;  %v787_v35 = vmul.f32 %v580_v17, %v3018_v29 }
  0x82   : > { %v588_v36 = vrot.slane %v434_v12, %v3011_v25  ;;  %v453_v37 = vcombine.high %v445_v7, %v445_v7  ;;  %v488_v38 = vcombine.high %v379_v5, %v380_v6  ;;  %v807_v39 = vmul.f32 %v660_v23, %v3018_v29 }
  0x83   : > { %983 = vmatprep.mubr.f32.mxu1 %v806_v31  ;;  %v511_v40 = vrot.slane %v495_v34, %v3000_v16  ;;  %v503_v41 = vcombine.high %v495_v34, %v495_v34  ;;  %v790_v42 = vmul.f32 %v592_v27, %v3016_v28  ;;  %v600_v43 = vrot.slane %v436_v30, %v3013_v26 }
  0x84   : > { %929 = vmatmul.mubr.f32.gmra.mrb[6].mxu0 %v783_v8  ;;  %984 = vmatmul.mubr.f32.gmra.mrb[4].mxu1 %v805_v32  ;;  %v608_v44 = vrot.slane %v3062_v18, %v3013_v26  ;;  %v789_v49 = vmul.f32 %v588_v36, %v3018_v29  ;;  %v596_v50 = vrot.slane %v436_v30, %v3011_v25 }
  0x85   : > { %933 = vmatprep.mubr.f32.mxu0 %v786_v9  ;;  %988 = vmatprep.mubr.f32.mxu1 %v808_v33  ;;  %v672_v45 = vrot.slane %v511_v40, %v3013_v26  ;;  %v668_v46 = vrot.slane %v511_v40, %v3011_v25  ;;  %v525_v47 = vrot.slane %v503_v41, %v3000_v16 }
  0x86   : > { %v533_v48 = vcombine.high %v511_v40, %v511_v40  ;;  %v475_v51 = vrot.slane %v453_v37, %v3000_v16  ;;  %v502_v52 = vrot.slane %v488_v38, %v3000_v16  ;;  %v792_v56 = vmul.f32 %v600_v43, %v3016_v28 }
  0x87   : > { %v810_v53 = vmul.f32 %v672_v45, %v3016_v28  ;;  %v809_v54 = vmul.f32 %v668_v46, %v3018_v29  ;;  %v680_v55 = vrot.slane %v525_v47, %v3013_v26  ;;  %v676_v57 = vrot.slane %v525_v47, %v3011_v25 }
  0x88   : > { %934 = vmatmul.mubr.f32.gmra.mrb[8].mxu0 %v785_v20  ;;  %989 = vmatmul.mubr.f32.gmra.mrb[6].mxu1 %v807_v39  ;;  %v688_v58 = vrot.slane %v533_v48, %v3013_v26  ;;  %v535_v59 = vcombine.high %v525_v47, %v525_v47  ;;  %v604_v60 = vrot.slane %v3062_v18, %v3011_v25 }
  0x89   : > { %938 = vmatprep.mubr.f32.mxu0 %v788_v24  ;;  %993 = vmatprep.mubr.f32.mxu1 %v810_v53  ;;  %v812_v61 = vmul.f32 %v680_v55, %v3016_v28  ;;  %v791_v62 = vmul.f32 %v596_v50, %v3018_v29  ;;  %v794_v63 = vmul.f32 %v608_v44, %v3016_v28 }
  0x8a   : > { %v616_v0 = vrot.slane %v475_v51, %v3013_v26  ;;  %v483_v1 = vcombine.high %v3062_v18, %v3062_v18  ;;  %v811_v2 = vmul.f32 %v676_v57, %v3018_v29  ;;  %v684_v3 = vrot.slane %v533_v48, %v3011_v25  ;;  %v825_v48 = vld [vmem:[#allocation2] sm:$0xff] }
  0x8b   : > { %v518_v4 = vrot.slane %v502_v52, %v3000_v16  ;;  %v814_v5 = vmul.f32 %v688_v58, %v3016_v28  ;;  %v696_v6 = vrot.slane %v535_v59, %v3013_v26  ;;  %v504_v7 = vcombine.high %v502_v52, %v502_v52  ;;  %v827_v58 = vld [vmem:[#allocation2 + $0x10] sm:$0xff] }
  0x8c   : > { %939 = vmatmul.mubr.f32.gmra.mrb[10].mxu0 %v787_v35  ;;  %994 = vmatmul.mubr.f32.gmra.mrb[8].mxu1 %v809_v54  ;;  %v793_v8 = vmul.f32 %v604_v60, %v3018_v29  ;;  %v796_v9 = vmul.f32 %v616_v0, %v3016_v28  ;;  %v612_v10 = vrot.slane %v475_v51, %v3011_v25  ;;  %v826_v54 = vld [vmem:[#allocation2 + $0x8] sm:$0xff] }
  0x8d   : > { %943 = vmatprep.mubr.f32.mxu0 %v790_v42  ;;  %998 = vmatprep.mubr.f32.mxu1 %v812_v61  ;;  %v485_v11 = vcombine.high %v475_v51, %v475_v51  ;;  %v624_v12 = vrot.slane %v483_v1, %v3013_v26  ;;  %v813_v13 = vmul.f32 %v684_v3, %v3018_v29 }
  0x8e   : > { %v692_v14 = vrot.slane %v535_v59, %v3011_v25  ;;  %v816_v15 = vmul.f32 %v696_v6, %v3016_v28  ;;  %v704_v17 = vrot.slane %v518_v4, %v3013_v26  ;;  %v532_v18 = vrot.slane %v504_v7, %v3000_v16  ;;  %v829_v7 = vld [vmem:[#allocation2 + $0x20] sm:$0xff] }
  0x8f   : > { %v795_v19 = vmul.f32 %v612_v10, %v3018_v29  ;;  %v620_v20 = vrot.slane %v483_v1, %v3011_v25  ;;  %v632_v21 = vrot.slane %v485_v11, %v3013_v26  ;;  %v700_v23 = vrot.slane %v518_v4, %v3011_v25  ;;  %v828_v1 = vld [vmem:[#allocation2 + $0x18] sm:$0xff] }
  0x90   : > { %944 = vmatmul.mubr.f32.gmra.mrb[12].mxu0 %v789_v49  ;;  %999 = vmatmul.mubr.f32.gmra.mrb[10].mxu1 %v811_v2  ;;  %v815_v22 = vmul.f32 %v692_v14, %v3018_v29  ;;  %v798_v24 = vmul.f32 %v624_v12, %v3016_v28  ;;  %v818_v27 = vmul.f32 %v704_v17, %v3016_v28  ;;  %v837_v49 = vld [vmem:[#allocation2 + $0x60] sm:$0xff] }
  0x91   : > { %948 = vmatprep.mubr.f32.mxu0 %v792_v56  ;;  %1003 = vmatprep.mubr.f32.mxu1 %v814_v5  ;;  %v712_v16 = vrot.slane %v532_v18, %v3013_v26  ;;  %v628_v30 = vrot.slane %v485_v11, %v3011_v25  ;;  %v797_v31 = vmul.f32 %v620_v20, %v3018_v29 }
  0x92   : > { %v817_v32 = vmul.f32 %v700_v23, %v3018_v29  ;;  %v708_v33 = vrot.slane %v532_v18, %v3011_v25  ;;  %v800_v34 = vmul.f32 %v632_v21, %v3016_v28  ;;  %v534_v38 = vcombine.high %v518_v4, %v518_v4 }
  0x93   : > { %v820_v35 = vmul.f32 %v712_v16, %v3016_v28  ;;  %v799_v36 = vmul.f32 %v628_v30, %v3018_v29  ;;  %v536_v42 = vcombine.high %v532_v18, %v532_v18  ;;  %v830_v18 = vld [vmem:[#allocation2 + $0x28] sm:$0xff]  ;;  %v831_v30 = vld [vmem:[#allocation2 + $0x30] sm:$0xff] }
  0x94   : > { %949 = vmatmul.mubr.f32.gmra.mrb[14].mxu0 %v791_v62  ;;  %1004 = vmatmul.mubr.f32.gmra.mrb[12].mxu1 %v813_v13  ;;  %v819_v37 = vmul.f32 %v708_v33, %v3018_v29  ;;  %v720_v39 = vrot.slane %v534_v38, %v3013_v26  ;;  %v716_v40 = vrot.slane %v534_v38, %v3011_v25 }
  0x95   : > { %953 = vmatprep.mubr.f32.mxu0 %v794_v63  ;;  %1008 = vmatprep.mubr.f32.mxu1 %v816_v15  ;;  %v728_v44 = vrot.slane %v536_v42, %v3013_v26  ;;  %v724_v45 = vrot.slane %v536_v42, %v3011_v25  ;;  %v838_v26 = vld [vmem:[#allocation2 + $0x68] sm:$0xff] }
  0x96   : > { %v822_v41 = vmul.f32 %v720_v39, %v3016_v28  ;;  %v821_v43 = vmul.f32 %v716_v40, %v3018_v29  ;;  %v832_v39 = vld [vmem:[#allocation2 + $0x38] sm:$0xff]  ;;  %v842_v40 = vld [vmem:[#allocation2 + $0x88] sm:$0xff] }
  0x97   : > { %v824_v46 = vmul.f32 %v728_v44, %v3016_v28  ;;  %v823_v47 = vmul.f32 %v724_v45, %v3018_v29 }
  0x98   : > { %954 = vmatmul.mubr.f32.gmra.mrb[16].mxu0 %v793_v8  ;;  %1009 = vmatmul.mubr.f32.gmra.mrb[14].mxu1 %v815_v22  ;;  %v839_v8 = vld [vmem:[#allocation2 + $0x70] sm:$0xff] }
  0x99   : > { %958 = vmatprep.mubr.f32.mxu0 %v796_v9  ;;  %1013 = vmatprep.mubr.f32.mxu1 %v818_v27 }
  0x9c   : > { %959 = vmatmul.mubr.f32.gmra.mrb[18].mxu0 %v795_v19  ;;  %1014 = vmatmul.mubr.f32.gmra.mrb[16].mxu1 %v817_v32  ;;  %v840_v19 = vld [vmem:[#allocation2 + $0x78] sm:$0xff] }
  0x9d   : > { %963 = vmatprep.mubr.f32.mxu0 %v798_v24  ;;  %1018 = vmatprep.mubr.f32.mxu1 %v820_v35 }
  0xa0   : > { %964 = vmatmul.mubr.f32.gmra.mrb[20].mxu0 %v797_v31  ;;  %1019 = vmatmul.mubr.f32.gmra.mrb[18].mxu1 %v819_v37  ;;  %v841_v31 = vld [vmem:[#allocation2 + $0x80] sm:$0xff] }
  0xa1   : > { %968 = vmatprep.mubr.f32.mxu0 %v800_v34  ;;  %1023 = vmatprep.mubr.f32.mxu1 %v822_v41 }
  0xa4   : > { %969 = vmatmul.mubr.f32.gmra.mrb[22].mxu0 %v799_v36  ;;  %1024 = vmatmul.mubr.f32.gmra.mrb[20].mxu1 %v821_v43 }
  0xa5   : > { %1028 = vmatprep.mubr.f32.mxu1 %v824_v46 }
  0xa8   : > { %1029 = vmatmul.mubr.f32.gmra.mrb[22].mxu1 %v823_v47 }
 0x14b   : > { %v915_v50 = vpop.f32.mrb[0].mxu0 }
 0x14c   : > { %v1034_v51 = vadd.f32 %v915_v50, %v825_v48  ;;  %v917_v52 = vpop.f32.mrb[1].mxu0  ;;  %v975_v53 = vpop.f32.mrb[0].mxu1  ;;  %v833_v48 = vld [vmem:[#allocation2 + $0x40] sm:$0xff] }
 0x14d   : > { %v1046_v55 = vadd.f32 %v975_v53, %v837_v49  ;;  %v977_v56 = vpop.f32.mrb[1].mxu1  ;;  %v843_v49 = vld [vmem:[#allocation2 + $0x90] sm:$0xff] }
 0x14e   : > { %1059 = vst.msk [vmem:[#allocation2] sm:$0xff] %vm336_vm0, %v1034_v51 }
 0x14f   : > { %v920_v57 = vpop.f32.mrb[2].mxu0  ;;  %1071 = vst.msk [vmem:[#allocation2 + $0x60] sm:$0xff] %vm336_vm0, %v1046_v55 }
 0x150   : > { %v1035_v25 = vadd.f32 %v920_v57, %v826_v54  ;;  %v922_v28 = vpop.f32.mrb[3].mxu0  ;;  %v980_v29 = vpop.f32.mrb[2].mxu1  ;;  %v844_v57 = vld [vmem:[#allocation2 + $0x98] sm:$0xff] }
 0x151   : > { %v1047_v59 = vadd.f32 %v980_v29, %v838_v26  ;;  %v982_v60 = vpop.f32.mrb[3].mxu1  ;;  %v834_v26 = vld [vmem:[#allocation2 + $0x48] sm:$0xff] }
 0x152   : > { %1060 = vst.msk [vmem:[#allocation2 + $0x8] sm:$0xff] %vm336_vm0, %v1035_v25 }
 0x153   : > { %v925_v61 = vpop.f32.mrb[4].mxu0  ;;  %1072 = vst.msk [vmem:[#allocation2 + $0x68] sm:$0xff] %vm336_vm0, %v1047_v59 }
 0x154   : > { %v1036_v62 = vadd.f32 %v925_v61, %v827_v58  ;;  %v927_v63 = vpop.f32.mrb[5].mxu0 }
 0x155   : > { %v3146_v0 = vld [vmem:[#allocation2] sm:$0xff] }
 0x156   : > { %1061 = vst.msk [vmem:[#allocation2 + $0x10] sm:$0xff] %vm336_vm0, %v1036_v62  ;;  %1087 = vxpose.xlu0.b32.start.end [1/1] (short) (narrow) %v3146_v0, 8  ;;  %v3150_v3 = vld [vmem:[#allocation2 + $0x60] sm:$0xff]  ;;  %v835_v62 = vld [vmem:[#allocation2 + $0x50] sm:$0xff] }
 0x157   : > { %v930_v2 = vpop.f32.mrb[6].mxu0  ;;  %v985_v11 = vpop.f32.mrb[4].mxu1  ;;  %v845_v63 = vld [vmem:[#allocation2 + $0xa0] sm:$0xff] }
 0x158   : > { %v1037_v4 = vadd.f32 %v930_v2, %v828_v1  ;;  %v932_v5 = vpop.f32.mrb[7].mxu0  ;;  %v1048_v14 = vadd.f32 %v985_v11, %v839_v8  ;;  %v987_v15 = vpop.f32.mrb[5].mxu1  ;;  %v836_v11 = vld [vmem:[#allocation2 + $0x58] sm:$0xff] }
 0x159   : > { %v3152_v6 = vld [vmem:[#allocation2 + $0x8] sm:$0xff] }
 0x15a   : > { %1062 = vst.msk [vmem:[#allocation2 + $0x18] sm:$0xff] %vm336_vm0, %v1037_v4  ;;  %1136 = vxpose.xlu1.b32.start.end [1/1] (short) (narrow) %v3152_v6, 8  ;;  %1675 = vxpose.xlu0.b32.start.end [1/1] (short) (narrow) %v3150_v3, 8  ;;  %v3157_v10 = vld [vmem:[#allocation2 + $0x68] sm:$0xff]  ;;  %1073 = vst.msk [vmem:[#allocation2 + $0x70] sm:$0xff] %vm336_vm0, %v1048_v14 }
 0x15b   : > { %v935_v9 = vpop.f32.mrb[8].mxu0  ;;  %v990_v21 = vpop.f32.mrb[6].mxu1 }
 0x15c   : > { %v1038_v12 = vadd.f32 %v935_v9, %v829_v7  ;;  %v937_v13 = vpop.f32.mrb[9].mxu0  ;;  %v1049_v24 = vadd.f32 %v990_v21, %v840_v19  ;;  %v992_v27 = vpop.f32.mrb[7].mxu1 }
 0x15d   : > { %v3159_v17 = vld [vmem:[#allocation2 + $0x10] sm:$0xff] }
 0x15e   : > { %1063 = vst.msk [vmem:[#allocation2 + $0x20] sm:$0xff] %vm336_vm0, %v1038_v12  ;;  %1185 = vxpose.xlu1.b32.start.end [1/1] (short) (narrow) %v3159_v17, 8  ;;  %1724 = vxpose.xlu0.b32.start.end [1/1] (short) (narrow) %v3157_v10, 8  ;;  %1074 = vst.msk [vmem:[#allocation2 + $0x78] sm:$0xff] %vm336_vm0, %v1049_v24  ;;  %v846_v12 = vld [vmem:[#allocation2 + $0xa8] sm:$0xff] }
 0x15f   : > { %v940_v20 = vpop.f32.mrb[10].mxu0  ;;  %v995_v33 = vpop.f32.mrb[8].mxu1 }
 0x160   : > { %v1039_v22 = vadd.f32 %v940_v20, %v830_v18  ;;  %v942_v23 = vpop.f32.mrb[11].mxu0  ;;  %v1050_v36 = vadd.f32 %v995_v33, %v841_v31  ;;  %v997_v37 = vpop.f32.mrb[9].mxu1 }
 0x161   : > { %v3165_v16 = vld [vmem:[#allocation2 + $0x18] sm:$0xff]  ;;  %v3206_v24 = vld [vmem:[#allocation2 + $0x70] sm:$0xff] }
 0x162   : > { %1064 = vst.msk [vmem:[#allocation2 + $0x28] sm:$0xff] %vm336_vm0, %v1039_v22  ;;  %1234 = vxpose.xlu0.b32.start.end [1/1] (short) (narrow) %v3165_v16, 8  ;;  %1075 = vst.msk [vmem:[#allocation2 + $0x80] sm:$0xff] %vm336_vm0, %v1050_v36 }
 0x163   : > { %v945_v32 = vpop.f32.mrb[12].mxu0  ;;  %v1000_v42 = vpop.f32.mrb[10].mxu1 }
 0x164   : > { %v1040_v34 = vadd.f32 %v945_v32, %v831_v30  ;;  %v947_v35 = vpop.f32.mrb[13].mxu0  ;;  %v1051_v45 = vadd.f32 %v1000_v42, %v842_v40  ;;  %v1002_v46 = vpop.f32.mrb[11].mxu1  ;;  %v847_v30 = vld [vmem:[#allocation2 + $0xb0] sm:$0xff] }
 0x165   : > { %v3170_v38 = vld [vmem:[#allocation2 + $0x20] sm:$0xff] }
 0x166   : > { %1065 = vst.msk [vmem:[#allocation2 + $0x30] sm:$0xff] %vm336_vm0, %v1040_v34  ;;  %1283 = vxpose.xlu0.b32.start.end [1/1] (short) (narrow) %v3170_v38, 8  ;;  %1076 = vst.msk [vmem:[#allocation2 + $0x88] sm:$0xff] %vm336_vm0, %v1051_v45  ;;  %v848_v34 = vld [vmem:[#allocation2 + $0xb8] sm:$0xff] }
 0x167   : > { %v950_v41 = vpop.f32.mrb[14].mxu0  ;;  %v1005_v51 = vpop.f32.mrb[12].mxu1 }
 0x168   : > { %v1041_v43 = vadd.f32 %v950_v41, %v832_v39  ;;  %v952_v44 = vpop.f32.mrb[15].mxu0  ;;  %v1052_v54 = vadd.f32 %v1005_v51, %v843_v49  ;;  %v1007_v55 = vpop.f32.mrb[13].mxu1 }
 0x169   : > { %v3175_v47 = vld [vmem:[#allocation2 + $0x28] sm:$0xff] }
 0x16a   : > { %1066 = vst.msk [vmem:[#allocation2 + $0x38] sm:$0xff] %vm336_vm0, %v1041_v43  ;;  %1332 = vxpose.xlu1.b32.start.end [1/1] (short) (narrow) %v3175_v47, 8  ;;  %1077 = vst.msk [vmem:[#allocation2 + $0x90] sm:$0xff] %vm336_vm0, %v1052_v54 }
 0x16b   : > { %v955_v50 = vpop.f32.mrb[16].mxu0  ;;  %v1010_v28 = vpop.f32.mrb[14].mxu1 }
 0x16c   : > { %v1042_v52 = vadd.f32 %v955_v50, %v833_v48  ;;  %v957_v53 = vpop.f32.mrb[17].mxu0  ;;  %v1053_v59 = vadd.f32 %v1010_v28, %v844_v57  ;;  %v1012_v60 = vpop.f32.mrb[15].mxu1 }
 0x16d   : > { %v3180_v56 = vld [vmem:[#allocation2 + $0x30] sm:$0xff] }
 0x16e   : > { %1067 = vst.msk [vmem:[#allocation2 + $0x40] sm:$0xff] %vm336_vm0, %v1042_v52  ;;  %1381 = vxpose.xlu0.b32.start.end [1/1] (short) (narrow) %v3180_v56, 8  ;;  %1078 = vst.msk [vmem:[#allocation2 + $0x98] sm:$0xff] %vm336_vm0, %v1053_v59 }
 0x16f   : > { %v960_v25 = vpop.f32.mrb[18].mxu0  ;;  %v1015_v2 = vpop.f32.mrb[16].mxu1 }
 0x170   : > { %v1043_v29 = vadd.f32 %v960_v25, %v834_v26  ;;  %v962_v58 = vpop.f32.mrb[19].mxu0  ;;  %v1054_v7 = vadd.f32 %v1015_v2, %v845_v63  ;;  %v1017_v8 = vpop.f32.mrb[17].mxu1  ;;  %v1120_v2 = vld [vmem:[%s3231_s9] sm:$0x1] }
 0x171   : > { %v3185_v61 = vld [vmem:[#allocation2 + $0x38] sm:$0xff]  ;;  %2441 = vpush %v1120_v2 }
 0x172   : > { %1068 = vst.msk [vmem:[#allocation2 + $0x48] sm:$0xff] %vm336_vm0, %v1043_v29  ;;  %1430 = vxpose.xlu0.b32.start.end [1/1] (short) (narrow) %v3185_v61, 8  ;;  %1079 = vst.msk [vmem:[#allocation2 + $0xa0] sm:$0xff] %vm336_vm0, %v1054_v7 }
 0x173   : > { %v965_v1 = vpop.f32.mrb[20].mxu0  ;;  %v1020_v14 = vpop.f32.mrb[18].mxu1 }
 0x174   : > { %v1044_v4 = vadd.f32 %v965_v1, %v835_v62  ;;  %v967_v5 = vpop.f32.mrb[21].mxu0  ;;  %v1055_v19 = vadd.f32 %v1020_v14, %v846_v12  ;;  %v1022_v20 = vpop.f32.mrb[19].mxu1 }
 0x175   : > { %v3190_v9 = vld [vmem:[#allocation2 + $0x40] sm:$0xff] }
 0x176   : > { %1069 = vst.msk [vmem:[#allocation2 + $0x50] sm:$0xff] %vm336_vm0, %v1044_v4  ;;  %1479 = vxpose.xlu1.b32.start.end [1/1] (short) (narrow) %v3190_v9, 8  ;;  %1080 = vst.msk [vmem:[#allocation2 + $0xa8] sm:$0xff] %vm336_vm0, %v1055_v19 }
 0x177   : > { %v970_v13 = vpop.f32.mrb[22].mxu0  ;;  %v1025_v31 = vpop.f32.mrb[20].mxu1 }
 0x178   : > { %v1045_v15 = vadd.f32 %v970_v13, %v836_v11  ;;  %v972_v18 = vpop.f32.mrb[23].mxu0  ;;  %v1056_v32 = vadd.f32 %v1025_v31, %v847_v30  ;;  %v1027_v33 = vpop.f32.mrb[21].mxu1 }
 0x179   : > { %v3195_v21 = vld [vmem:[#allocation2 + $0x48] sm:$0xff] }
 0x17a   : > { %1070 = vst.msk [vmem:[#allocation2 + $0x58] sm:$0xff] %vm336_vm0, %v1045_v15  ;;  %1528 = vxpose.xlu0.b32.start.end [1/1] (short) (narrow) %v3195_v21, 8  ;;  %1081 = vst.msk [vmem:[#allocation2 + $0xb0] sm:$0xff] %vm336_vm0, %v1056_v32 }
 0x17b   : > { %v1030_v35 = vpop.f32.mrb[22].mxu1 }
 0x17c   : > { %v1057_v36 = vadd.f32 %v1030_v35, %v848_v34  ;;  %v1032_v37 = vpop.f32.mrb[23].mxu1 }
 0x17d   : > { %v3200_v22 = vld [vmem:[#allocation2 + $0x50] sm:$0xff]  ;;  %v3209_v27 = vld [vmem:[#allocation2 + $0xa8] sm:$0xff] }
 0x17e   : > { %1577 = vxpose.xlu0.b32.start.end [1/1] (short) (narrow) %v3200_v22, 8  ;;  %1082 = vst.msk [vmem:[#allocation2 + $0xb8] sm:$0xff] %vm336_vm0, %v1057_v36 }
 0x181   : > { %v3203_v23 = vld [vmem:[#allocation2 + $0x58] sm:$0xff] }
 0x182   : > { %1626 = vxpose.xlu1.b32.start.end [1/1] (short) (narrow) %v3203_v23, 8 }
 0x186   : > { %1773 = vxpose.xlu1.b32.start.end [1/1] (short) (narrow) %v3206_v24, 8 }
 0x18a   : > { %2116 = vxpose.xlu1.b32.start.end [1/1] (short) (narrow) %v3209_v27, 8 }
 0x1a2   : > { %s3313_s24 = spop %2441 }
 0x1d6   : > { %v1103_v39 = vpop.trf.xlu0 }
 0x1d7   : > { %v1119_v40 = vadd.f32 %v1103_v39, %v3146_v0  ;;  %v3254_v39 = vld [vmem:[#allocation2 + $0x80] sm:$0xff] }
 0x1d9   : > { %v1122_v41 = vmul.f32 %v1119_v40, %v1119_v40  ;;  %v3257_v40 = vld [vmem:[#allocation2 + $0x88] sm:$0xff] }
 0x1da   : > { %v1152_v42 = vpop.trf.xlu1  ;;  %v1691_v43 = vpop.trf.xlu0 }
 0x1db   : > { %v1168_v44 = vadd.f32 %v1152_v42, %v3152_v6  ;;  %v1123_v45 = vsel %vm336_vm0, %v1122_v41, 0.0  ;;  %v1707_v11 = vadd.f32 %v1691_v43, %v3150_v3  ;;  %v3263_v41 = vld [vmem:[#allocation2 + $0x98] sm:$0xff]  ;;  %v3266_v42 = vld [vmem:[#allocation2 + $0xa0] sm:$0xff]  ;;  %v3269_v43 = vld [vmem:[#allocation2 + $0xb0] sm:$0xff] }
 0x1dc   : > { %1124 = vadd.xlane.f32.xlu0 %v1123_v45 }
 0x1dd   : > { %v1171_v46 = vmul.f32 %v1168_v44, %v1168_v44  ;;  %v1710_v15 = vmul.f32 %v1707_v11, %v1707_v11  ;;  %v3272_v44 = vld [vmem:[#allocation2 + $0xb8] sm:$0xff] }
 0x1de   : > { %v1201_v48 = vpop.trf.xlu1  ;;  %v1740_v49 = vpop.trf.xlu0 }
 0x1df   : > { %v1217_v50 = vadd.f32 %v1201_v48, %v3159_v17  ;;  %v1172_v51 = vsel %vm336_vm0, %v1171_v46, 0.0  ;;  %v1756_v30 = vadd.f32 %v1740_v49, %v3157_v10  ;;  %v1711_v3 = vsel %vm336_vm0, %v1710_v15, 0.0 }
 0x1e0   : > { %1173 = vadd.xlane.f32.xlu1 %v1172_v51 }
 0x1e1   : > { %v1220_v52 = vmul.f32 %v1217_v50, %v1217_v50  ;;  %v1759_v34 = vmul.f32 %v1756_v30, %v1756_v30 }
 0x1e2   : > { %v1250_v53 = vpop.trf.xlu0 }
 0x1e3   : > { %v1266_v0 = vadd.f32 %v1250_v53, %v3165_v16  ;;  %v1221_v54 = vsel %vm336_vm0, %v1220_v52, 0.0  ;;  %v1760_v37 = vsel %vm336_vm0, %v1759_v34, 0.0 }
 0x1e4   : > { %1222 = vadd.xlane.f32.xlu0 %v1221_v54 }
 0x1e5   : > { %v1269_v6 = vmul.f32 %v1266_v0, %v1266_v0 }
 0x1e6   : > { %v1299_v55 = vpop.trf.xlu0 }
 0x1e7   : > { %v1315_v26 = vadd.f32 %v1299_v55, %v3170_v38  ;;  %v1270_v57 = vsel %vm336_vm0, %v1269_v6, 0.0 }
 0x1e8   : > { %1271 = vadd.xlane.f32.xlu1 %v1270_v57 }
 0x1e9   : > { %v1318_v25 = vmul.f32 %v1315_v26, %v1315_v26 }
 0x1ea   : > { %v1348_v17 = vpop.trf.xlu1 }
 0x1eb   : > { %v1364_v28 = vadd.f32 %v1348_v17, %v3175_v47  ;;  %v1319_v29 = vsel %vm336_vm0, %v1318_v25, 0.0  ;;  %v1169_v17 = vld [vmem:[%s3231_s9 + $0x1] sm:$0x1] }
 0x1ec   : > { %1320 = vadd.xlane.f32.xlu0 %v1319_v29 }
 0x1ed   : > { %v1367_v58 = vmul.f32 %v1364_v28, %v1364_v28 }
 0x1ee   : > { %v1397_v16 = vpop.trf.xlu0 }
 0x1ef   : > { %v1413_v59 = vadd.f32 %v1397_v16, %v3180_v56  ;;  %v1368_v60 = vsel %vm336_vm0, %v1367_v58, 0.0 }
 0x1f0   : > { %1369 = vadd.xlane.f32.xlu0 %v1368_v60 }
 0x1f1   : > { %v1416_v62 = vmul.f32 %v1413_v59, %v1413_v59 }
 0x1f2   : > { %v1446_v38 = vpop.trf.xlu0 }
 0x1f3   : > { %v1462_v47 = vadd.f32 %v1446_v38, %v3185_v61  ;;  %v1417_v63 = vsel %vm336_vm0, %v1416_v62, 0.0  ;;  %v1218_v38 = vld [vmem:[%s3231_s9 + $0x2] sm:$0x1] }
 0x1f4   : > { %1418 = vadd.xlane.f32.xlu1 %v1417_v63 }
 0x1f5   : > { %v1465_v1 = vmul.f32 %v1462_v47, %v1462_v47 }
 0x1f6   : > { %v1495_v4 = vpop.trf.xlu1 }
 0x1f7   : > { %v1511_v56 = vadd.f32 %v1495_v4, %v3190_v9  ;;  %v1466_v5 = vsel %vm336_vm0, %v1465_v1, 0.0 }
 0x1f8   : > { %1467 = vadd.xlane.f32.xlu0 %v1466_v5 }
 0x1f9   : > { %v1514_v7 = vmul.f32 %v1511_v56, %v1511_v56 }
 0x1fa   : > { %v1544_v8 = vpop.trf.xlu0 }
 0x1fb   : > { %v1560_v12 = vadd.f32 %v1544_v8, %v3195_v21  ;;  %v1515_v61 = vsel %vm336_vm0, %v1514_v7, 0.0  ;;  %v1267_v7 = vld [vmem:[%s3231_s9 + $0x3] sm:$0x1] }
 0x1fc   : > { %1516 = vadd.xlane.f32.xlu0 %v1515_v61 }
 0x1fd   : > { %v1563_v13 = vmul.f32 %v1560_v12, %v1560_v12 }
 0x1fe   : > { %v1593_v14 = vpop.trf.xlu0 }
 0x1ff   : > { %v1609_v18 = vadd.f32 %v1593_v14, %v3200_v22  ;;  %v1564_v19 = vsel %vm336_vm0, %v1563_v13, 0.0 }
 0x200   : > { %1565 = vadd.xlane.f32.xlu1 %v1564_v19 }
 0x201   : > { %v1612_v9 = vmul.f32 %v1609_v18, %v1609_v18  ;;  %v1316_v18 = vld [vmem:[%s3231_s9 + $0x4] sm:$0x1] }
 0x202   : > { %v1642_v20 = vpop.trf.xlu1 }
 0x203   : > { %v1658_v31 = vadd.f32 %v1642_v20, %v3203_v23  ;;  %v1613_v21 = vsel %vm336_vm0, %v1612_v9, 0.0  ;;  %v3251_v23 = vld [vmem:[#allocation2 + $0x78] sm:$0xff] }
 0x204   : > { %1712 = vadd.xlane.f32.xlu1 %v1711_v3  ;;  %1614 = vadd.xlane.f32.xlu0 %v1613_v21 }
 0x205   : > { %v1661_v32 = vmul.f32 %v1658_v31, %v1658_v31 }
 0x206   : > { %v1789_v33 = vpop.trf.xlu1 }
 0x207   : > { %v1805_v22 = vadd.f32 %v1789_v33, %v3206_v24  ;;  %v1662_v35 = vsel %vm336_vm0, %v1661_v32, 0.0  ;;  %v3260_v24 = vld [vmem:[#allocation2 + $0x90] sm:$0xff]  ;;  %v1365_v32 = vld [vmem:[%s3231_s9 + $0x5] sm:$0x1] }
 0x208   : > { %1663 = vadd.xlane.f32.xlu0 %v1662_v35 }
 0x209   : > { %v1808_v36 = vmul.f32 %v1805_v22, %v1805_v22 }
 0x20a   : > { %v3275_v45 = vpop.trf.xlu1 }
 0x20b   : > { %v1809_v10 = vsel %vm336_vm0, %v1808_v36, 0.0 }
 0x20c   : > { %1761 = vadd.xlane.f32.xlu0 %v1760_v37 }
 0x210   : > { %1810 = vadd.xlane.f32.xlu0 %v1809_v10 }
 0x23d   : > { %1822 = vxpose.xlu0.b32.start.end [1/1] (short) (narrow) %v3251_v23, 8 }
 0x241   : > { %1871 = vxpose.xlu0.b32.start.end [1/1] (short) (narrow) %v3254_v39, 8 }
 0x245   : > { %1920 = vxpose.xlu0.b32.start.end [1/1] (short) (narrow) %v3257_v40, 8 }
 0x249   : > { %1969 = vxpose.xlu0.b32.start.end [1/1] (short) (narrow) %v3260_v24, 8 }
 0x24d   : > { %2018 = vxpose.xlu0.b32.start.end [1/1] (short) (narrow) %v3263_v41, 8 }
 0x251   : > { %2067 = vxpose.xlu0.b32.start.end [1/1] (short) (narrow) %v3266_v42, 8 }
 0x255   : > { %2165 = vxpose.xlu0.b32.start.end [1/1] (short) (narrow) %v3269_v43, 8 }
 0x259   : > { %2214 = vxpose.xlu0.b32.start.end [1/1] (short) (narrow) %v3272_v44, 8 }
 0x269   : > { %v1125_v46 = vpop.xlane.xlu0 %1124 }
 0x26a   : > { %v1126_v48 = vrot.slane %v1125_v46, 4 }
 0x26c   : > { %v1127_v49 = vadd.f32 %v1126_v48, %v1125_v46  ;;  %v1414_v46 = vld [vmem:[%s3231_s9 + $0x6] sm:$0x1] }
 0x26d   : > { %v1174_v50 = vpop.xlane.xlu1 %1173 }
 0x26e   : > { %v1128_v51 = vrot.slane %v1127_v49, 2  ;;  %v1175_v52 = vrot.slane %v1174_v50, 4 }
 0x270   : > { %v1176_v53 = vadd.f32 %v1175_v52, %v1174_v50  ;;  %v1129_v0 = vadd.f32 %v1128_v51, %v1127_v49 }
 0x271   : > { %v1223_v54 = vpop.xlane.xlu0 %1222 }
 0x272   : > { %v1177_v6 = vrot.slane %v1176_v53, 2  ;;  %v1224_v55 = vrot.slane %v1223_v54, 4  ;;  %v1130_v26 = vrot.slane %v1129_v0, 1 }
 0x274   : > { %v1225_v57 = vadd.f32 %v1224_v55, %v1223_v54  ;;  %v1131_v25 = vadd.f32 %v1130_v26, %v1129_v0  ;;  %v1178_v28 = vadd.f32 %v1177_v6, %v1176_v53  ;;  %v1463_v54 = vld [vmem:[%s3231_s9 + $0x7] sm:$0x1] }
 0x275   : > { %v1272_v29 = vpop.xlane.xlu1 %1271 }
 0x276   : > { %v1226_v58 = vrot.slane %v1225_v57, 2  ;;  %v1273_v16 = vrot.slane %v1272_v29, 4  ;;  %2443 = vpush %v1131_v25  ;;  %v1179_v59 = vrot.slane %v1178_v28, 1 }
 0x277   : > { %2445 = vpush %v1169_v17 }
 0x278   : > { %v1274_v60 = vadd.f32 %v1273_v16, %v1272_v29  ;;  %v1180_v62 = vadd.f32 %v1179_v59, %v1178_v28  ;;  %v1227_v47 = vadd.f32 %v1226_v58, %v1225_v57  ;;  %v1512_v29 = vld [vmem:[%s3231_s9 + $0x8] sm:$0x1] }
 0x279   : > { %v1321_v63 = vpop.xlane.xlu0 %1320 }
 0x27a   : > { %v1275_v1 = vrot.slane %v1274_v60, 2  ;;  %v1322_v2 = vrot.slane %v1321_v63, 4  ;;  %2447 = vpush %v1180_v62  ;;  %v1228_v4 = vrot.slane %v1227_v47, 1 }
 0x27b   : > { %2449 = vpush %v1218_v38 }
 0x27c   : > { %v1323_v56 = vadd.f32 %v1322_v2, %v1321_v63  ;;  %v1229_v5 = vadd.f32 %v1228_v4, %v1227_v47  ;;  %v1276_v8 = vadd.f32 %v1275_v1, %v1274_v60  ;;  %v1561_v4 = vld [vmem:[%s3231_s9 + $0x9] sm:$0x1] }
 0x27d   : > { %v1370_v11 = vpop.xlane.xlu0 %1369 }
 0x27e   : > { %v1324_v12 = vrot.slane %v1323_v56, 2  ;;  %v1371_v61 = vrot.slane %v1370_v11, 4  ;;  %2451 = vpush %v1229_v5  ;;  %v1277_v13 = vrot.slane %v1276_v8, 1 }
 0x27f   : > { %2453 = vpush %v1267_v7 }
 0x280   : > { %v1372_v14 = vadd.f32 %v1371_v61, %v1370_v11  ;;  %v1278_v15 = vadd.f32 %v1277_v13, %v1276_v8  ;;  %v1325_v19 = vadd.f32 %v1324_v12, %v1323_v56 }
 0x281   : > { %v1419_v9 = vpop.xlane.xlu1 %1418 }
 0x282   : > { %v1373_v20 = vrot.slane %v1372_v14, 2  ;;  %v1420_v30 = vrot.slane %v1419_v9, 4  ;;  %2455 = vpush %v1278_v15  ;;  %v1326_v31 = vrot.slane %v1325_v19, 1 }
 0x283   : > { %2457 = vpush %v1316_v18 }
 0x284   : > { %v1421_v3 = vadd.f32 %v1420_v30, %v1419_v9  ;;  %v1327_v21 = vadd.f32 %v1326_v31, %v1325_v19  ;;  %v1374_v33 = vadd.f32 %v1373_v20, %v1372_v14  ;;  %v1610_v14 = vld [vmem:[%s3231_s9 + $0xa] sm:$0x1] }
 0x285   : > { %v1468_v34 = vpop.xlane.xlu0 %1467 }
 0x286   : > { %v1422_v22 = vrot.slane %v1421_v3, 2  ;;  %v1469_v35 = vrot.slane %v1468_v34, 4  ;;  %2459 = vpush %v1327_v21  ;;  %v1375_v36 = vrot.slane %v1374_v33, 1  ;;  %v1659_v21 = vld [vmem:[%s3231_s9 + $0xb] sm:$0x1] }
 0x287   : > { %2461 = vpush %v1365_v32 }
 0x288   : > { %v1470_v37 = vadd.f32 %v1469_v35, %v1468_v34  ;;  %v1376_v10 = vadd.f32 %v1375_v36, %v1374_v33  ;;  %v1423_v48 = vadd.f32 %v1422_v22, %v1421_v3 }
 0x289   : > { %v1517_v49 = vpop.xlane.xlu0 %1516 }
 0x28a   : > { %v1471_v50 = vrot.slane %v1470_v37, 2  ;;  %v1518_v51 = vrot.slane %v1517_v49, 4  ;;  %2463 = vpush %v1376_v10  ;;  %v1424_v52 = vrot.slane %v1423_v48, 1 }
 0x28b   : > { %2465 = vpush %v1414_v46  ;;  %v1708_v46 = vld [vmem:[%s3231_s9 + $0xc] sm:$0x1] }
 0x28c   : > { %v1519_v53 = vadd.f32 %v1518_v51, %v1517_v49  ;;  %v1425_v0 = vadd.f32 %v1424_v52, %v1423_v48  ;;  %v1472_v6 = vadd.f32 %v1471_v50, %v1470_v37  ;;  %v1757_v51 = vld [vmem:[%s3231_s9 + $0xd] sm:$0x1] }
 0x28d   : > { %v1566_v55 = vpop.xlane.xlu1 %1565 }
 0x28e   : > { %v1520_v26 = vrot.slane %v1519_v53, 2  ;;  %v1567_v57 = vrot.slane %v1566_v55, 4  ;;  %2467 = vpush %v1425_v0  ;;  %v1473_v25 = vrot.slane %v1472_v6, 1  ;;  %v1806_v0 = vld [vmem:[%s3231_s9 + $0xe] sm:$0x1] }
 0x28f   : > { %2469 = vpush %v1463_v54 }
 0x290   : > { %v1568_v17 = vadd.f32 %v1567_v57, %v1566_v55  ;;  %v1474_v28 = vadd.f32 %v1473_v25, %v1472_v6  ;;  %v1521_v58 = vadd.f32 %v1520_v26, %v1519_v53 }
 0x291   : > { %v1713_v16 = vpop.xlane.xlu1 %1712  ;;  %v1615_v59 = vpop.xlane.xlu0 %1614 }
 0x292   : > { %v1569_v60 = vrot.slane %v1568_v17, 2  ;;  %v1714_v62 = vrot.slane %v1713_v16, 4  ;;  %v1616_v38 = vrot.slane %v1615_v59, 4  ;;  %2471 = vpush %v1474_v28  ;;  %v1522_v47 = vrot.slane %v1521_v58, 1 }
 0x293   : > { %2473 = vpush %v1512_v29 }
 0x294   : > { %v1715_v63 = vadd.f32 %v1714_v62, %v1713_v16  ;;  %v1617_v1 = vadd.f32 %v1616_v38, %v1615_v59  ;;  %v1523_v2 = vadd.f32 %v1522_v47, %v1521_v58  ;;  %v1570_v56 = vadd.f32 %v1569_v60, %v1568_v17 }
 0x295   : > { %v1664_v5 = vpop.xlane.xlu0 %1663 }
 0x296   : > { %v1716_v7 = vrot.slane %v1715_v63, 2  ;;  %v1618_v8 = vrot.slane %v1617_v1, 2  ;;  %v1665_v11 = vrot.slane %v1664_v5, 4  ;;  %2475 = vpush %v1523_v2  ;;  %v1571_v12 = vrot.slane %v1570_v56, 1 }
 0x297   : > { %2477 = vpush %v1561_v4 }
 0x298   : > { %v1666_v61 = vadd.f32 %v1665_v11, %v1664_v5  ;;  %v1572_v13 = vadd.f32 %v1571_v12, %v1570_v56  ;;  %v1619_v15 = vadd.f32 %v1618_v8, %v1617_v1  ;;  %v1717_v30 = vadd.f32 %v1716_v7, %v1715_v63 }
 0x299   : > { %v1762_v18 = vpop.xlane.xlu0 %1761 }
 0x29a   : > { %v1667_v19 = vrot.slane %v1666_v61, 2  ;;  %v1763_v9 = vrot.slane %v1762_v18, 4  ;;  %2479 = vpush %v1572_v13  ;;  %v1620_v20 = vrot.slane %v1619_v15, 1  ;;  %v1718_v36 = vrot.slane %v1717_v30, 1 }
 0x29b   : > { %2481 = vpush %v1610_v14 }
 0x29c   : > { %v1764_v31 = vadd.f32 %v1763_v9, %v1762_v18  ;;  %v1621_v3 = vadd.f32 %v1620_v20, %v1619_v15  ;;  %v1668_v32 = vadd.f32 %v1667_v19, %v1666_v61  ;;  %v1719_v50 = vadd.f32 %v1718_v36, %v1717_v30  ;;  %v1855_v18 = vld [vmem:[%s3231_s9 + $0xf] sm:$0x1]  ;;  %v1904_v36 = vld [vmem:[%s3231_s9 + $0x10] sm:$0x1] }
 0x29d   : > { %v1811_v33 = vpop.xlane.xlu0 %1810 }
 0x29e   : > { %v1765_v34 = vrot.slane %v1764_v31, 2  ;;  %v1812_v22 = vrot.slane %v1811_v33, 4  ;;  %2483 = vpush %v1621_v3  ;;  %v1669_v35 = vrot.slane %v1668_v32, 1 }
 0x29f   : > { %2485 = vpush %v1659_v21 }
 0x2a0   : > { %v1813_v37 = vadd.f32 %v1812_v22, %v1811_v33  ;;  %v1670_v10 = vadd.f32 %v1669_v35, %v1668_v32  ;;  %v1766_v48 = vadd.f32 %v1765_v34, %v1764_v31 }
 0x2a2   : > { %v1814_v49 = vrot.slane %v1813_v37, 2  ;;  %2487 = vpush %v1670_v10  ;;  %v1767_v52 = vrot.slane %v1766_v48, 1 }
 0x2a3   : > { %2489 = vpush %v1708_v46 }
 0x2a4   : > { %2491 = vpush %v1719_v50  ;;  %v1768_v53 = vadd.f32 %v1767_v52, %v1766_v48  ;;  %v1815_v54 = vadd.f32 %v1814_v49, %v1813_v37  ;;  %v1953_v52 = vld [vmem:[%s3231_s9 + $0x11] sm:$0x1] }
 0x2a5   : > { %2493 = vpush %v1757_v51 }
 0x2a6   : > { %2495 = vpush %v1768_v53  ;;  %v1816_v6 = vrot.slane %v1815_v54, 1 }
 0x2a7   : > { %2497 = vpush %v1806_v0  ;;  %s3315_s25 = spop %2443 }
 0x2a8   : > { %v1817_v55 = vadd.f32 %v1816_v6, %v1815_v54  ;;  %s3318_s22 = spop %2445  ;;  %s1133_s14 = smul.f32 %s3315_s25, %s3313_s24 }
 0x2aa   : > { %2499 = vpush %v1817_v55 }
 0x2ab   : > { %2501 = vpush %v1855_v18  ;;  %s3320_s5 = spop %2447 }
 0x2ac   : > { %s3322_s13 = spop %2449  ;;  %s1182_s26 = smul.f32 %s3320_s5, %s3318_s22 }
 0x2ae   : > { %s1183_s22 = sadd.f32 %s1182_s26, %s1133_s14 }
 0x2af   : > { %s3325_s21 = spop %2451 }
 0x2b0   : > { %s3327_s27 = spop %2453  ;;  %s1231_s0 = smul.f32 %s3325_s21, %s3322_s13 }
 0x2b2   : > { %s1232_s25 = sadd.f32 %s1231_s0, %s1183_s22 }
 0x2b3   : > { %s3330_s6 = spop %2455 }
 0x2b4   : > { %s3332_s8 = spop %2457  ;;  %s1280_s5 = smul.f32 %s3330_s6, %s3327_s27 }
 0x2b6   : > { %s1281_s21 = sadd.f32 %s1280_s5, %s1232_s25 }
 0x2b7   : > { %s3334_s10 = spop %2459 }
 0x2b8   : > { %s3339_s7 = spop %2461  ;;  %s1329_s3 = smul.f32 %s3334_s10, %s3332_s8 }
 0x2bb   : > { %s3344_s12 = spop %2463 }
 0x2bc   : > { %s3348_s1 = spop %2465  ;;  %s1378_s19 = smul.f32 %s3344_s12, %s3339_s7 }
 0x2bd   : > { %v1838_v26 = vpop.trf.xlu0 }
 0x2be   : > { %v1854_v57 = vadd.f32 %v1838_v26, %v3251_v23 }
 0x2bf   : > { %s2468_s2 = spop %2467 }
 0x2c0   : > { %v1857_v25 = vmul.f32 %v1854_v57, %v1854_v57  ;;  %s2470_s24 = spop %2469  ;;  %s1427_s17 = smul.f32 %s2468_s2, %s3348_s1 }
 0x2c1   : > { %v1887_v17 = vpop.trf.xlu0 }
 0x2c2   : > { %v1903_v28 = vadd.f32 %v1887_v17, %v3254_v39  ;;  %v1858_v29 = vsel %vm336_vm0, %v1857_v25, 0.0  ;;  %v2148_v39 = vadd.f32 %v3275_v45, %v3209_v27  ;;  %v2002_v25 = vld [vmem:[%s3231_s9 + $0x12] sm:$0x1] }
 0x2c3   : > { %1859 = vadd.xlane.f32.xlu1 %v1858_v29  ;;  %s2472_s13 = spop %2471 }
 0x2c4   : > { %v1906_v58 = vmul.f32 %v1903_v28, %v1903_v28  ;;  %v2151_v5 = vmul.f32 %v2148_v39, %v2148_v39  ;;  %s2474_s23 = spop %2473  ;;  %s1476_s6 = smul.f32 %s2472_s13, %s2470_s24 }
 0x2c5   : > { %v1936_v16 = vpop.trf.xlu0 }
 0x2c6   : > { %v1952_v59 = vadd.f32 %v1936_v16, %v3257_v40  ;;  %v1907_v60 = vsel %vm336_vm0, %v1906_v58, 0.0  ;;  %v2152_v27 = vsel %vm336_vm0, %v2151_v5, 0.0 }
 0x2c7   : > { %1908 = vadd.xlane.f32.xlu1 %v1907_v60  ;;  %s2476_s29 = spop %2475 }
 0x2c8   : > { %v1955_v62 = vmul.f32 %v1952_v59, %v1952_v59  ;;  %s2478_s26 = spop %2477  ;;  %s1525_s30 = smul.f32 %s2476_s29, %s2474_s23 }
 0x2c9   : > { %v1985_v38 = vpop.trf.xlu0 }
 0x2ca   : > { %v2001_v47 = vadd.f32 %v1985_v38, %v3260_v24  ;;  %v1956_v23 = vsel %vm336_vm0, %v1955_v62, 0.0 }
 0x2cb   : > { %1957 = vadd.xlane.f32.xlu1 %v1956_v23  ;;  %v2051_v23 = vld [vmem:[%s3231_s9 + $0x13] sm:$0x1]  ;;  %s2480_s27 = spop %2479 }
 0x2cc   : > { %v2004_v63 = vmul.f32 %v2001_v47, %v2001_v47  ;;  %s2482_s16 = spop %2481  ;;  %s1574_s8 = smul.f32 %s2480_s27, %s2478_s26 }
 0x2cd   : > { %v2034_v1 = vpop.trf.xlu0 }
 0x2ce   : > { %v2050_v2 = vadd.f32 %v2034_v1, %v3263_v41  ;;  %v2005_v4 = vsel %vm336_vm0, %v2004_v63, 0.0 }
 0x2cf   : > { %2006 = vadd.xlane.f32.xlu1 %v2005_v4  ;;  %s2484_s15 = spop %2483 }
 0x2d0   : > { %v2053_v40 = vmul.f32 %v2050_v2, %v2050_v2  ;;  %s2486_s4 = spop %2485  ;;  %s1623_s5 = smul.f32 %s2484_s15, %s2482_s16 }
 0x2d1   : > { %v2083_v56 = vpop.trf.xlu0 }
 0x2d2   : > { %v2099_v7 = vadd.f32 %v2083_v56, %v3266_v42  ;;  %v2054_v24 = vsel %vm336_vm0, %v2053_v40, 0.0 }
 0x2d3   : > { %2055 = vadd.xlane.f32.xlu1 %v2054_v24  ;;  %v2100_v24 = vld [vmem:[%s3231_s9 + $0x14] sm:$0x1]  ;;  %s2488_s10 = spop %2487 }
 0x2d4   : > { %v2102_v8 = vmul.f32 %v2099_v7, %v2099_v7  ;;  %s2490_s25 = spop %2489  ;;  %s1672_s7 = smul.f32 %s2488_s10, %s2486_s4 }
 0x2d5   : > { %v2181_v11 = vpop.trf.xlu0 }
 0x2d6   : > { %v2197_v12 = vadd.f32 %v2181_v11, %v3269_v43  ;;  %v2103_v41 = vsel %vm336_vm0, %v2102_v8, 0.0 }
 0x2d7   : > { %2153 = vadd.xlane.f32.xlu1 %v2152_v27  ;;  %2104 = vadd.xlane.f32.xlu0 %v2103_v41 }
 0x2d8   : > { %v2200_v45 = vmul.f32 %v2197_v12, %v2197_v12 }
 0x2d9   : > { %v2230_v61 = vpop.trf.xlu0 }
 0x2da   : > { %v2246_v13 = vadd.f32 %v2230_v61, %v3272_v44  ;;  %v2201_v42 = vsel %vm336_vm0, %v2200_v45, 0.0 }
 0x2db   : > { %2202 = vadd.xlane.f32.xlu0 %v2201_v42  ;;  %v2149_v42 = vld [vmem:[%s3231_s9 + $0x15] sm:$0x1] }
 0x2dc   : > { %v2249_v14 = vmul.f32 %v2246_v13, %v2246_v13 }
 0x2de   : > { %v2250_v15 = vsel %vm336_vm0, %v2249_v14, 0.0 }
 0x2df   : > { %2251 = vadd.xlane.f32.xlu0 %v2250_v15 }
 0x350   : > { %v1860_v43 = vpop.xlane.xlu1 %1859 }
 0x351   : > { %v1861_v19 = vrot.slane %v1860_v43, 4 }
 0x353   : > { %v1862_v9 = vadd.f32 %v1861_v19, %v1860_v43  ;;  %v2198_v43 = vld [vmem:[%s3231_s9 + $0x16] sm:$0x1] }
 0x354   : > { %v1909_v20 = vpop.xlane.xlu1 %1908 }
 0x355   : > { %v1863_v30 = vrot.slane %v1862_v9, 2  ;;  %v1910_v31 = vrot.slane %v1909_v20, 4 }
 0x357   : > { %v1911_v3 = vadd.f32 %v1910_v31, %v1909_v20  ;;  %v1864_v21 = vadd.f32 %v1863_v30, %v1862_v9  ;;  %v2247_v30 = vld [vmem:[%s3231_s9 + $0x17] sm:$0x1]  ;;  %s1330_s9 = sadd.f32 %s1329_s3, %s1281_s21  ;;  %s2492_s3 = spop %2491 }
 0x358   : > { %v1958_v32 = vpop.xlane.xlu1 %1957  ;;  %s2494_s12 = spop %2493  ;;  %s1721_s24 = smul.f32 %s2492_s3, %s2490_s25 }
 0x359   : > { %v1912_v44 = vrot.slane %v1911_v3, 2  ;;  %v1959_v33 = vrot.slane %v1958_v32, 4  ;;  %v1865_v34 = vrot.slane %v1864_v21, 1  ;;  %s1379_s14 = sadd.f32 %s1378_s19, %s1330_s9  ;;  %s2496_s2 = spop %2495 }
 0x35a   : > { %s2498_s21 = spop %2497  ;;  %s1770_s29 = smul.f32 %s2496_s2, %s2494_s12 }
 0x35b   : > { %v1960_v22 = vadd.f32 %v1959_v33, %v1958_v32  ;;  %v1866_v35 = vadd.f32 %v1865_v34, %v1864_v21  ;;  %v1913_v37 = vadd.f32 %v1912_v44, %v1911_v3  ;;  %s1428_s20 = sadd.f32 %s1427_s17, %s1379_s14  ;;  %s2500_s13 = spop %2499 }
 0x35c   : > { %v2007_v10 = vpop.xlane.xlu1 %2006  ;;  %s2502_s17 = spop %2501 }
 0x35d   : > { %v1961_v46 = vrot.slane %v1960_v22, 2  ;;  %v2008_v48 = vrot.slane %v2007_v10, 4  ;;  %2503 = vpush %v1866_v35  ;;  %v1914_v49 = vrot.slane %v1913_v37, 1  ;;  %s1477_s0 = sadd.f32 %s1476_s6, %s1428_s20  ;;  %s1819_s20 = smul.f32 %s2500_s13, %s2498_s21 }
 0x35e   : > { %2505 = vpush %v1904_v36 }
 0x35f   : > { %v2009_v50 = vadd.f32 %v2008_v48, %v2007_v10  ;;  %v1915_v51 = vadd.f32 %v1914_v49, %v1913_v37  ;;  %v1962_v53 = vadd.f32 %v1961_v46, %v1960_v22  ;;  %s1526_s22 = sadd.f32 %s1525_s30, %s1477_s0 }
 0x360   : > { %v2056_v0 = vpop.xlane.xlu1 %2055 }
 0x361   : > { %v2010_v54 = vrot.slane %v2009_v50, 2  ;;  %v2057_v6 = vrot.slane %v2056_v0, 4  ;;  %2507 = vpush %v1915_v51  ;;  %v1963_v55 = vrot.slane %v1962_v53, 1  ;;  %s1575_s28 = sadd.f32 %s1574_s8, %s1526_s22 }
 0x362   : > { %2509 = vpush %v1953_v52 }
 0x363   : > { %v2058_v26 = vadd.f32 %v2057_v6, %v2056_v0  ;;  %v1964_v57 = vadd.f32 %v1963_v55, %v1962_v53  ;;  %v2011_v17 = vadd.f32 %v2010_v54, %v2009_v50  ;;  %s1624_s1 = sadd.f32 %s1623_s5, %s1575_s28 }
 0x364   : > { %v2154_v28 = vpop.xlane.xlu1 %2153  ;;  %v2105_v29 = vpop.xlane.xlu0 %2104 }
 0x365   : > { %v2059_v58 = vrot.slane %v2058_v26, 2  ;;  %v2155_v16 = vrot.slane %v2154_v28, 4  ;;  %v2106_v59 = vrot.slane %v2105_v29, 4  ;;  %2511 = vpush %v1964_v57  ;;  %v2012_v60 = vrot.slane %v2011_v17, 1  ;;  %s1673_s19 = sadd.f32 %s1672_s7, %s1624_s1 }
 0x366   : > { %2513 = vpush %v2002_v25 }
 0x367   : > { %v2156_v62 = vadd.f32 %v2155_v16, %v2154_v28  ;;  %v2107_v38 = vadd.f32 %v2106_v59, %v2105_v29  ;;  %v2013_v47 = vadd.f32 %v2012_v60, %v2011_v17  ;;  %v2060_v63 = vadd.f32 %v2059_v58, %v2058_v26  ;;  %s1722_s23 = sadd.f32 %s1721_s24, %s1673_s19  ;;  %s2425_s19 = sshll.u32 %s2944_s11, 3 }
 0x368   : > { %v2203_v1 = vpop.xlane.xlu0 %2202 }
 0x369   : > { %v2157_v39 = vrot.slane %v2156_v62, 2  ;;  %v2108_v2 = vrot.slane %v2107_v38, 2  ;;  %v2204_v4 = vrot.slane %v2203_v1, 4  ;;  %2515 = vpush %v2013_v47  ;;  %v2061_v40 = vrot.slane %v2060_v63, 1  ;;  %s1771_s14 = sadd.f32 %s1770_s29, %s1722_s23 }
 0x36a   : > { %2517 = vpush %v2051_v23 }
 0x36b   : > { %v2158_v56 = vadd.f32 %v2157_v39, %v2156_v62  ;;  %v2205_v5 = vadd.f32 %v2204_v4, %v2203_v1  ;;  %v2062_v7 = vadd.f32 %v2061_v40, %v2060_v63  ;;  %v2109_v8 = vadd.f32 %v2108_v2, %v2107_v38  ;;  %s1820_s4 = sadd.f32 %s1819_s20, %s1771_s14 }
 0x36c   : > { %v2252_v11 = vpop.xlane.xlu0 %2251 }
 0x36d   : > { %v2206_v12 = vrot.slane %v2205_v5, 2  ;;  %v2253_v27 = vrot.slane %v2252_v11, 4  ;;  %2519 = vpush %v2062_v7  ;;  %v2110_v41 = vrot.slane %v2109_v8, 1  ;;  %v2159_v45 = vrot.slane %v2158_v56, 1 }
 0x36e   : > { %2521 = vpush %v2100_v24 }
 0x36f   : > { %v2254_v61 = vadd.f32 %v2253_v27, %v2252_v11  ;;  %v2111_v13 = vadd.f32 %v2110_v41, %v2109_v8  ;;  %v2160_v14 = vadd.f32 %v2159_v45, %v2158_v56  ;;  %v2207_v15 = vadd.f32 %v2206_v12, %v2205_v5 }
 0x371   : > { %v2255_v18 = vrot.slane %v2254_v61, 2  ;;  %2523 = vpush %v2111_v13  ;;  %v2208_v19 = vrot.slane %v2207_v15, 1 }
 0x372   : > { %2525 = vpush %v2149_v42 }
 0x373   : > { %v2256_v9 = vadd.f32 %v2255_v18, %v2254_v61  ;;  %2527 = vpush %v2160_v14  ;;  %v2209_v20 = vadd.f32 %v2208_v19, %v2207_v15 }
 0x374   : > { %2529 = vpush %v2198_v43 }
 0x375   : > { %2531 = vpush %v2209_v20  ;;  %v2257_v31 = vrot.slane %v2256_v9, 1 }
 0x376   : > { %2533 = vpush %v2247_v30 }
 0x377   : > { %v2258_v3 = vadd.f32 %v2257_v31, %v2256_v9 }
 0x379   : > { %2535 = vpush %v2258_v3 }
 0x38e   : > { %s2504_s9 = spop %2503 }
 0x38f   : > { %s2506_s26 = spop %2505  ;;  %s1868_s15 = smul.f32 %s2504_s9, %s2502_s17 }
 0x391   : > { %s1869_s0 = sadd.f32 %s1868_s15, %s1820_s4  ;;  %s3457_s15 = sld [smem:[#allocation18_spill]] }
 0x392   : > { %s2508_s30 = spop %2507  ;;  %s2430_s4 = sshll.u32 %s2746_s18, 7 }
 0x393   : > { %s2510_s16 = spop %2509  ;;  %s1917_s27 = smul.f32 %s2508_s30, %s2506_s26 }
 0x395   : > { %s1918_s22 = sadd.f32 %s1917_s27, %s1869_s0 }
 0x396   : > { %s2512_s6 = spop %2511 }
 0x397   : > { %s2514_s28 = spop %2513  ;;  %s1966_s8 = smul.f32 %s2512_s6, %s2510_s16 }
 0x398   : > { %s314_s6 = scalar_lea.vmem [#allocation8], %s2425_s19  ;;  %p3459_p7 = scmp.ne.s32.totalorder %s3457_s15, 0 }
 0x399   : > { %s1967_s7 = sadd.f32 %s1966_s8, %s1918_s22 }
 0x39a   : > { %s2516_s10 = spop %2515 }
 0x39b   : > { %s2015_s5 = smul.f32 %s2516_s10, %s2514_s28  ;;  %s2518_s25 = spop %2517 }
 0x39c   : > { %s2278_s28 = sshll.u32 %s314_s6, 4  ;;  %s3365_s28 = int_to_ptr.vmem [resolvable:$true] %s2278_s28 }
 0x39d   : > { %s2016_s1 = sadd.f32 %s2015_s5, %s1967_s7  ;;  %s2668_s18 = scalar_lea.vmem %s3365_s28, 128 }
 0x39e   : > { %s2520_s3 = spop %2519  ;;  %p2669_p5 = scmp.ne.s32.totalorder %s3365_s28, %s2668_s18 }
 0x39f   : > { %s2064_s12 = smul.f32 %s2520_s3, %s2518_s25  ;;  %s2522_s2 = spop %2521 }
 0x3a0   : > { %s3458_s25 = sld [smem:[#allocation25_spill]]  ;;  %s2265_s3 = scalar_lea.sflag [#allocation5], %s2944_s11 }
 0x3a1   : > { %s2065_s21 = sadd.f32 %s2064_s12, %s2016_s1  ;;  %p2670_p13 = pnand %p2669_p5, %p3459_p7 }
 0x3a2   : > { %s2524_s24 = spop %2523  ;;  %s2762_s12 = smov [#allocation8]  }
 0x3a3   : > { %s2113_s13 = smul.f32 %s2524_s24, %s2522_s2  ;;  %s2526_s17 = spop %2525 }
 0x3a4   : > { %s2528_s23 = spop %2527  ;;  %p2671_p10 = pneg %p2670_p13 }
 0x3a5   : > { %s2114_s29 = sadd.f32 %s2113_s13, %s2065_s21  ;;  %s2162_s9 = smul.f32 %s2528_s23, %s2526_s17 }
 0x3a6   : > { %s2530_s20 = spop %2529  ;;  %s3363_s7 = scalar_lea.hbm %s3458_s25, %s2430_s4 }
 0x3a7   : > { %s2163_s26 = sadd.f32 %s2162_s9, %s2114_s29  ;;  %s2532_s14 = spop %2531 }
 0x3a8   : > { %s2211_s30 = smul.f32 %s2532_s14, %s2530_s20  ;;  %s2534_s16 = spop %2533 }
 0x3a9   : > { %s2672_s1 = sshll.u32 %s2762_s12, 4  ;;  %s2673_s1 = int_to_ptr.vmem [resolvable:$false] %s2672_s1 }
 0x3aa   : > { %s2536_s27 = spop %2535  ;;  %s2212_s0 = sadd.f32 %s2211_s30, %s2163_s26 }
 0x3ab   : > { %s2260_s8 = smul.f32 %s2536_s27, %s2534_s16  ;;  %s2674_s2 = scalar_lea.vmem %s2673_s1, 256 }
 0x3ac   : > { %p2675_p12 = scmp.lt.s32.totalorder %s3365_s28, %s2673_s1  ;;  %p2676_p1 = scmp.lt.s32.totalorder %s2674_s2, %s2668_s18 }
 0x3ad   : > { %s2261_s10 = sadd.f32 %s2260_s8, %s2212_s0 }
 0x3ae   : > { %p2677_p2 = por %p2676_p1, %p2675_p12 }
 0x3af   : > { %v2262_v21 = vstv %s2261_s10 }
 0x3b0   : > { %2263 = vst [vmem:[%s314_s6] sm:$0xff] %v2262_v21  ;;  %p2678_p9 = pnand %p2677_p2, %p2671_p10 }
 0x3b2   : > { %2681 = shalt.err (!%p2678_p9)
}
 0x3b3   : > { %s2682_s11 = scalar_lea.hbm %s3363_s7, 128  ;;  %s2686_s24 = scalar_lea.hbm %s3458_s25, 256 }
 0x3b4   : > { %p2683_p11 = scmp.ne.s32.totalorder %s3363_s7, %s2682_s11  ;;  %p2687_p4 = scmp.lt.u32.totalorder %s3363_s7, %s3458_s25 }
 0x3b5   : > { %p2688_p8 = scmp.lt.u32.totalorder %s2686_s24, %s2682_s11  ;;  %p2690_p5 = scmp.lt.u32.totalorder %s2682_s11, %s3363_s7 }
 0x3b6   : > { %p2684_p3 = pnand %p2683_p11, %p3459_p7 }
 0x3b7   : > { %p2689_p0 = por %p2688_p8, %p2687_p4 }
 0x3b8   : > { %p2685_p6 = pneg %p2684_p3 }
 0x3b9   : > { %p2691_p13 = por %p2690_p5, %p2689_p0 }
 0x3bb   : > { %p2692_p10 = pnand %p2691_p13, %p2685_p6 }
 0x3bd   : > { %2695 = shalt.err (!%p2692_p10)
}
 0x3be   : > { %2541 = dma.vmem_to_hbm [thread:$0]  (%p3459_p7), %s3365_s28, 128, %s3363_s7, %s2265_s3  }
 0x3bf PF: > { %s3460_s23 = sld [smem:[#allocation12_spill]]  ;;  %s3461_s29 = sld [smem:[#allocation20_spill]] }
 0x3c0   : > { %s3462_s9 = sld [smem:[#allocation16_spill]] }
 0x3c5   : > { %s2290_s20 = sand.u32 1, %s3460_s23   ;;  %p3463_p12 = scmp.ne.s32.totalorder %s3461_s29, 0 }
 0x3c6   : > { %p3464_p1 = scmp.ge.s32.totalorder %s3462_s9, 2  ;;  %s2291_s26 = scalar_lea.sflag [#allocation5], %s2290_s20 }
 0x3c8   : > { %p2551_p2 = pnand %p3464_p1, %p3463_p12 }
 0x3ca   : > { %2729 = dma.done.wait (!%p2551_p2), %s2291_s26, 128  }
 0x3cb   : > { %2731 = vsyncadd (!%p2551_p2), %s2291_s26, 4294967168  ;;  %s23_s20 = sadd.s32 1, %s3462_s9   ;;  %s3465_s15 = sld [smem:[#allocation13_spill]] }
 0x3cc   : > { %p20_p9 = scmp.ge.s32.totalorder %s23_s20, 4   ;;  %s3466_s16 = sld [smem:[#allocation14_spill]] }
 0x3cd   : > { %s3467_s17 = sld [smem:[#allocation19_spill]]  ;;  %s3468_s18 = sld [smem:[#allocation15_spill]] }
 0x3ce   : > { %s3469_s19 = sld [smem:[#allocation17_spill]]  ;;  %22 = sbr.rel (!%p20_p9) target bundleno = 14 (0xe), region = 108 }
 0x3d5   :  { %2296 = vsyncpa [#allocation4], 1 }
 0x3d6   :  { %2298 = vsyncpa [#allocation4 + $0x1], 1 }
 0x3d7   :  { %2299 = vsyncpa [#allocation7], 1 }
 0x3d8   :  { %2301 = vsyncpa [#allocation7 + $0x1], 1 }
 0x3d9   :  { %2302 = vsyncpa [#allocation5], 1 }
 0x3da   :  { %2304 = vsyncpa [#allocation5 + $0x1], 1 }

</bundles_post_ra>
